<compile_context>
chip_gen: v6e
topology: v6e:2x2x1
jax: 0.10.0
libtpu: 0.0.40
codegen_flags: <defaults>
</compile_context>

<pallas_src>
import jax
import jax.numpy as jnp
from jax.experimental import pallas as pl
from jax.experimental.pallas import tpu as pltpu


LANES = 128
ACC_ROWS = 8                 # accumulator tile = one (8, 128) vreg
BLOCK_ROWS = 4096            # (4096, 128) f32 block = 2 MiB per grid step


def _tensorcores_per_chip():
    """Best-effort TC-per-chip count. Single-TC: v5e/v6e. 2-TC: v4/v5p/v7x."""
    try:
        kind = jax.devices()[0].device_kind.lower()
    except Exception:
        return 1
    if any(t in kind for t in ("lite", "v5e", "v6e", "v6")):
        return 1
    if any(t in kind for t in ("v4", "v5p", "v5", "v7")):
        return 2
    return 1


_NSPLIT = _tensorcores_per_chip()


def _sumsq_kernel(x_ref, out_ref):
    """Grid (nsplit, blocks_per_split); reduction axis last.

    x_ref   : (BLOCK_ROWS, LANES) VMEM tile of the flattened input (native dtype)
    out_ref : (ACC_ROWS, LANES) f32 output tile, one per split; resident across
              the reduction axis, used directly as the accumulator.
    """
    @pl.when(pl.program_id(1) == 0)
    def _():
        out_ref[...] = jnp.zeros_like(out_ref)

    x = x_ref[...].astype(jnp.float32)   # per-block upcast in VMEM (no HBM copy)
    xx = x * x
    # Layout-preserving sublane-group reshape: summing axis 0 is vreg-wise
    # VALU adds only (no XLU, no copy), collapsing the block to one (8,128) tile.
    out_ref[...] += jnp.sum(
        xx.reshape(BLOCK_ROWS // ACC_ROWS, ACC_ROWS, LANES), axis=0)


def _pallas_sumsq(x2d, nsplit, blocks_per_split):
    """x2d: (nsplit*blocks_per_split*BLOCK_ROWS, LANES), native dtype.
    Returns scalar f32 sum(x**2)."""
    rows = x2d.shape[0]
    itemsize = jnp.dtype(x2d.dtype).itemsize

    out = pl.pallas_call(
        _sumsq_kernel,
        out_shape=jax.ShapeDtypeStruct((nsplit * ACC_ROWS, LANES), jnp.float32),
        grid_spec=pltpu.PrefetchScalarGridSpec(
            num_scalar_prefetch=0,
            grid=(nsplit, blocks_per_split),
            in_specs=[pl.BlockSpec(
                (BLOCK_ROWS, LANES),
                lambda p, k: (p * blocks_per_split + k, 0))],
            out_specs=pl.BlockSpec((ACC_ROWS, LANES), lambda p, k: (p, 0)),
        ),
        compiler_params=pltpu.CompilerParams(
            dimension_semantics=("parallel", "arbitrary"),
        ),
        cost_estimate=pl.CostEstimate(
            flops=2 * rows * LANES,
            transcendentals=0,
            bytes_accessed=rows * LANES * itemsize
            + nsplit * ACC_ROWS * LANES * 4,
        ),
    )(x2d)

    # (nsplit*8, 128) partial sums -> scalar (tiny, fused by XLA).
    return jnp.sum(out)


def _sum_of_squares(flat, n):
    """flat: 1-D array (native dtype), n == flat.size. Scalar f32 sum(x**2)."""
    main_rows = n // LANES
    num_blocks = main_rows // BLOCK_ROWS

    ssq = jnp.float32(0.0)
    covered = 0
    if num_blocks > 0:
        nsplit = max(1, min(_NSPLIT, num_blocks))
        blocks_per_split = num_blocks // nsplit
        covered_rows = nsplit * blocks_per_split * BLOCK_ROWS
        covered = covered_rows * LANES
        x2d = (flat if covered == n else flat[:covered]).reshape(
            covered_rows, LANES)
        ssq = ssq + _pallas_sumsq(x2d, nsplit, blocks_per_split)

    if covered < n:
        # Bounded remainder (< NSPLIT*BLOCK_ROWS*LANES elems) + sub-128 tail:
        # a single fused XLA reduce, no per-vreg masking inside the kernel.
        rem = flat[covered:]
        ssq = ssq + jnp.sum(jnp.square(rem.astype(jnp.float32)))

    return ssq


class RegularizationCalculatorConstantDelta:
    """JAX/Pallas port of the PyTorch module."""

    def __init__(self, loss_params):
        self.params = loss_params

    def forward(self, global_theta, pred_params, hidden_states,
                step_ahead_cov_preds, batch, ret_each_term=False):
        # Python-level config branch, same as the PyTorch module
        # (loss_params is static w.r.t. jit, like the original module).
        if self.params['delta_reg'] == 0:
            delta_reg = jnp.float32(0.0)
        else:
            delta_reg = self.compute_delta_reg(pred_params, global_theta)
        delta_reg = jnp.float32(self.params['delta_reg']) * delta_reg
        if ret_each_term:
            return delta_reg
        return delta_reg

    def compute_delta_reg(self, pred_params, global_theta):
        n = pred_params.size
        flat = jnp.ravel(pred_params)          # layout-only; no dtype cast
        ssq = _sum_of_squares(flat, n)
        return ssq / jnp.float32(n)

    __call__ = forward


if __name__ == "__main__":
    key = jax.random.PRNGKey(0)
    k1, k2, k3, k4, k5, k6 = jax.random.split(key, 6)

    # Small, module-consistent synthetic inputs (only pred_params is used).
    pred_params = jax.random.normal(k1, (2, 4, 16, 16), dtype=jnp.float32)
    global_theta = jax.random.normal(k2, (32,), dtype=jnp.float32)
    hidden_states = jax.random.normal(k3, (2, 8, 32), dtype=jnp.float32)
    step_ahead_cov_preds = jax.random.normal(k4, (2, 8, 4), dtype=jnp.float32)
    batch = None

    loss_params = {'delta_reg': 0.5}
    module = RegularizationCalculatorConstantDelta(loss_params)

    # 1) Small input -> no full block -> fused XLA fallback path.
    out = jax.block_until_ready(
        module(global_theta, pred_params, hidden_states,
               step_ahead_cov_preds, batch))
    ref = loss_params['delta_reg'] * jnp.mean(
        pred_params.astype(jnp.float32) ** 2)
    assert jnp.allclose(out, ref, rtol=1e-6, atol=1e-6), (out, ref)

    # 2) Larger f32 input (exact block coverage) -> Pallas kernel, no remainder.
    big_f32 = jax.random.normal(k5, (512, 2048), dtype=jnp.float32)
    out_big = jax.block_until_ready(
        module(global_theta, big_f32, hidden_states,
               step_ahead_cov_preds, batch))
    ref_big = loss_params['delta_reg'] * jnp.mean(
        big_f32.astype(jnp.float32) ** 2)
    assert jnp.allclose(out_big, ref_big, rtol=1e-4, atol=1e-6), (out_big, ref_big)

    # 3) Ragged bf16 input -> Pallas kernel for the full blocks, JAX-side
    #    remainder (leftover rows + sub-128 tail), in-kernel dtype upcast.
    big_bf16 = jax.random.normal(k6, (3, 1111, 517), dtype=jnp.bfloat16)
    out_bf16 = jax.block_until_ready(
        module(global_theta, big_bf16, hidden_states,
               step_ahead_cov_preds, batch))
    ref_bf16 = loss_params['delta_reg'] * jnp.mean(
        big_bf16.astype(jnp.float32) ** 2)
    assert jnp.allclose(out_bf16, ref_bf16, rtol=1e-4, atol=1e-6), (
        out_bf16, ref_bf16)

    # 4) delta_reg == 0 branch.
    module0 = RegularizationCalculatorConstantDelta({'delta_reg': 0})
    out0 = jax.block_until_ready(
        module0(global_theta, pred_params, hidden_states,
                step_ahead_cov_preds, batch))
    assert out0 == 0.0

    print("KERNEL_OK")
</pallas_src>

<mosaic_0001>
module attributes {stable_mosaic.version = 11 : i64} {
  func.func @_sumsq_kernel(%arg0: i32, %arg1: i32, %arg2: memref<4096x128xf32, #tpu.memory_space<vmem>>, %arg3: memref<8x128xf32, #tpu.memory_space<vmem>>) attributes {dimension_semantics = [#tpu.dimension_semantics<parallel>, #tpu.dimension_semantics<arbitrary>], iteration_bounds = array<i64: 1, 2>, scalar_prefetch = 0 : i64, scratch_operands = 0 : i64, tpu.core_type = #tpu.core_type<tc>, window_params = [{transform_indices = @transform_0, window_bounds = array<i64: 4096, 128>}, {transform_indices = @transform_1, window_bounds = array<i64: 8, 128>}]} {
    %c0_i32 = arith.constant 0 : i32
    %0 = arith.cmpi eq, %arg1, %c0_i32 : i32
    %1 = arith.extui %0 : i1 to i32
    %c0_i32_0 = arith.constant 0 : i32
    %2 = arith.cmpi ne, %1, %c0_i32_0 : i32
    scf.if %2 {
      %cst_6 = arith.constant 0.000000e+00 : f32
      %10 = vector.broadcast %cst_6 : f32 to vector<8x128xf32>
      %c0_7 = arith.constant 0 : index
      %c0_8 = arith.constant 0 : index
      %11 = vector.load %arg3[%c0_7, %c0_8] : memref<8x128xf32, #tpu.memory_space<vmem>>, vector<8x128xf32>
      tpu.vector_store %arg3[%c0_7, %c0_8], %10 {strides = array<i32>} : memref<8x128xf32, #tpu.memory_space<vmem>>, vector<8x128xf32>,
    } else {
    }
    %c0 = arith.constant 0 : index
    %c0_1 = arith.constant 0 : index
    %3 = vector.load %arg2[%c0, %c0_1] : memref<4096x128xf32, #tpu.memory_space<vmem>>, vector<4096x128xf32>
    %4 = arith.mulf %3, %3 : vector<4096x128xf32>
    %c0_2 = arith.constant 0 : index
    %c0_3 = arith.constant 0 : index
    %5 = vector.load %arg3[%c0_2, %c0_3] : memref<8x128xf32, #tpu.memory_space<vmem>>, vector<8x128xf32>
    %6 = vector.shape_cast %4 : vector<4096x128xf32> to vector<512x8x128xf32>
    %cst = arith.constant dense<0.000000e+00> : vector<8x128xf32>
    %7 = vector.multi_reduction <add>, %6, %cst [0] : vector<512x8x128xf32> to vector<8x128xf32>
    %8 = arith.addf %5, %7 : vector<8x128xf32>
    %c0_4 = arith.constant 0 : index
    %c0_5 = arith.constant 0 : index
    %9 = vector.load %arg3[%c0_4, %c0_5] : memref<8x128xf32, #tpu.memory_space<vmem>>, vector<8x128xf32>
    tpu.vector_store %arg3[%c0_4, %c0_5], %8 {strides = array<i32>} : memref<8x128xf32, #tpu.memory_space<vmem>>, vector<8x128xf32>,
    return
  }
  func.func @transform_0(%arg0: i32, %arg1: i32) -> (i32, i32) {
    %c2_i32 = arith.constant 2 : i32
    %0 = arith.muli %arg0, %c2_i32 : i32
    %1 = arith.addi %0, %arg1 : i32
    %c0_i32 = arith.constant 0 : i32
    %c0_i32_0 = arith.constant 0 : i32
    return %1, %c0_i32 : i32, i32
  }
  func.func @transform_1(%arg0: i32, %arg1: i32) -> (i32, i32) {
    %c0_i32 = arith.constant 0 : i32
    %c0_i32_0 = arith.constant 0 : i32
    return %arg0, %c0_i32 : i32, i32
  }
}

</mosaic_0001>

<bundles_post_ra>
// kernel: tpu_custom_call.1
= control target key start
LH: loop header
LB: loop body
LE: loop exit
PB: predicated region body
PF: predicated region fallthrough
CT: control target
= control target key end

     0   :  { %6 = vsyncpa [#allocation3], 0  ;;  %s2591_s0 = inlined_call_operand.hbm [shape: f32[8192,128], index: 0, kind: input, shape index: {}]   ;;  %s2592_s1 = inlined_call_operand.hbm [shape: f32[8,128], index: 1, kind: output, shape index: {}]  }
   0x1   :  { %8 = vsyncpa [#allocation3 + $0x1], 0 }
   0x2   :  { %9 = vsyncpa [#allocation4], 0  ;;  %s1966_s6 = smov 0   ;;  %s1968_s7 = smov 0  }
   0x3   :  { %s1970_s8 = smov 0   ;;  %s1972_s9 = smov 0  }
   0x4   :  { %s1974_s10 = smov 0   ;;  %s1976_s11 = smov 0  }
   0x5 LB: > { %s1764_s12 = sadd.s32 4294967295, %s1949_s11   ;;  %s24_s13 = sadd.s32 1, %s1945_s10  ;;  %s1949_s11 = sphi %s1976_s11, %s15_s11   ;;  %s1945_s10 = sphi %s1974_s10, %s2601_s10   ;;  %s1941_s9 = sphi %s1972_s9, %s2600_s9   ;;  %s1937_s8 = sphi %s1970_s8, %s2599_s8   ;;  %s1933_s7 = sphi %s1968_s7, %s2598_s7   ;;  %s1929_s6 = sphi %s1966_s6, %s2597_s6  }
   0x6   : > { %p25_p0 = scmp.ge.s32.totalorder %s24_s13, 2  ;;  %s38_s14 = sadd.s32 1, %s1937_s8 }
   0x7   : > { %p45_p1 = scmp.ne.s32.totalorder %s1937_s8, %s1933_s7  ;;  %p46_p2 = scmp.eq.s32.totalorder %s1949_s11, 0 }
   0x8   : > { %s2603_s13 = smov (%p25_p0, %s24_s13), 0  ;;  %p51_p4 = scmp.ne.s32.totalorder %s1933_s7, %s1929_s6 }
   0x9   : > { %p2002_p3 = por %p46_p2, %p45_p1  ;;  %s35_s16 = ssub.s32 %s1945_s10, %s2603_s13 }
   0xa   : > { %p52_p5 = scmp.eq.s32.totalorder %s1764_s12, 0  ;;  %p36_p6 = scmp.eq.s32.totalorder %s35_s16, 0 }
   0xb   : > { %p1788_p8 = scmp.lt.s32.totalorder %s1949_s11, 2  ;;  %s101_s19 = sand.u32 1, %s1937_s8  }
   0xc   : > { %p2011_p7 = por %p52_p5, %p51_p4  ;;  %s1777_s20 = sshll.u32 %s1945_s10, 16 }
   0xd   : > { %s2017_s18 = scalar_select %p36_p6, %s1937_s8, %s38_s14  }
   0xe   : > { %s1767_s21 = sshll.u32 %s101_s19, 12  ;;  %s113_s24 = scalar_lea.hbm %s2591_s0, %s1777_s20 }
   0xf   : > { %s105_s25 = scalar_lea.vmem [#allocation2], %s1767_s21  ;;  %p2026_p9 = pnand %p1788_p8, %p2002_p3 }
  0x10   : > { %s114_s26 = sshll.u32 %s105_s25, 4  ;;  %s102_s28 = scalar_lea.sflag [#allocation3], %s101_s19  ;;  %s115_s26 = int_to_ptr.vmem [resolvable:$true] %s114_s26 }
  0x11   : > { %p1845_p10 = pneg %p2026_p9  ;;  %s1856_s29 = scalar_lea.vmem %s115_s26, 65536 }
  0x12   : > { %p1857_p11 = scmp.ne.s32.totalorder %s115_s26, %s1856_s29  ;;  %s1951_s30 = smov [#allocation2]  }
  0x13   : > { %s1861_s2 = sshll.u32 %s1951_s30, 4  ;;  %s1862_s2 = int_to_ptr.vmem [resolvable:$false] %s1861_s2 }
  0x14   : > { %p1859_p12 = pnand %p1857_p11, %p1845_p10  ;;  %s1863_s3 = scalar_lea.vmem %s1862_s2, 131072 }
  0x15   : > { %p1864_p0 = scmp.lt.s32.totalorder %s115_s26, %s1862_s2  ;;  %p1865_p1 = scmp.lt.s32.totalorder %s1863_s3, %s1856_s29 }
  0x16   : > { %p1860_p13 = pneg %p1859_p12 }
  0x17   : > { %p1866_p2 = por %p1865_p1, %p1864_p0 }
  0x19   : > { %p1867_p3 = pnand %p1866_p2, %p1860_p13 }
  0x1b   : > { %1870 = shalt.err (!%p1867_p3)
}
  0x1c   : > { %s1952_s4 = smov 128   ;;  %s1953_s5 = smov 8  }
  0x1d   : > { %1787 = dma.hbm_to_vmem [thread:$0]  (!%p2026_p9), %s113_s24, 65536, %s115_s26, %s102_s28, %s1952_s4, %s1952_s4, %s1953_s5  }
  0x1e   : > { %p1770_p4 = scmp.ge.s32.totalorder %s1949_s11, 1  ;;  %p122_p5 = scmp.lt.s32.totalorder %s1949_s11, 3 }
  0x20   : > { %p123_p6 = pnand %p1770_p4, %p122_p5 }
  0x21   : > { %s128_s6 = sand.u32 (!%p123_p6), 1, %s1933_s7  }
  0x22   : > { %126 = sbr.rel (%p123_p6) target bundleno = 1081 (0x439), region = 24  ;;  %s1771_s14 = sshll.u32 (!%p123_p6), %s128_s6, 12 }
  0x23   : > { %s129_s15 = scalar_lea.sflag (!%p123_p6), [#allocation3], %s128_s6  ;;  %s2037_s16 = scalar_lea.vmem (!%p123_p6), [#allocation2], %s1771_s14 }
  0x27   : > { %1920 = dma.done.wait (%p2011_p7), %s129_s15, 65536  }
  0x28   : > { %1922 = vsyncadd (%p2011_p7), %s129_s15, 4294901760  ;;  %p1772_p8 = scmp.ne.s32.totalorder %s1941_s9, 0 }
  0x2a   : > { %152 = sbr.rel (%p1772_p8) target bundleno = 49 (0x31), region = 32 }
  0x2f   : > { %v1954_v0 = vmov 0.0  }
  0x30   : > { %153 = vst [vmem:[#allocation5] sm:$0xff] %v1954_v0 }
  0x31 PF: > { %v154_v1 = vld [vmem:[%s2037_s16] sm:$0xff]  ;;  %v155_v2 = vld [vmem:[%s2037_s16 + $0x8] sm:$0xff]  ;;  %v156_v3 = vld [vmem:[%s2037_s16 + $0x10] sm:$0xff]  ;;  %s1955_s9 = smov [#allocation5]   ;;  %p2558_p7 = scmp.eq.s32.totalorder %s1764_s12, 1 }
  0x32   : > { %v157_v4 = vld [vmem:[%s2037_s16 + $0x18] sm:$0xff]  ;;  %v666_v5 = vmul.f32 %v154_v1, %v154_v1  ;;  %v667_v6 = vmul.f32 %v155_v2, %v155_v2  ;;  %v668_v7 = vmul.f32 %v156_v3, %v156_v3  ;;  %v158_v10 = vld [vmem:[%s2037_s16 + $0x20] sm:$0xff]  ;;  %v159_v14 = vld [vmem:[%s2037_s16 + $0x28] sm:$0xff]  ;;  %s1701_s17 = sshll.u32 %s1955_s9, 4  ;;  %s1702_s17 = int_to_ptr.vmem [resolvable:$true] %s1701_s17 }
  0x33   : > { %v669_v8 = vmul.f32 %v157_v4, %v157_v4  ;;  %v670_v12 = vmul.f32 %v158_v10, %v158_v10  ;;  %v671_v15 = vmul.f32 %v159_v14, %v159_v14  ;;  %v160_v17 = vld [vmem:[%s2037_s16 + $0x30] sm:$0xff]  ;;  %v161_v20 = vld [vmem:[%s2037_s16 + $0x38] sm:$0xff]  ;;  %v162_v23 = vld [vmem:[%s2037_s16 + $0x40] sm:$0xff]  ;;  %s1871_s20 = scalar_lea.vmem %s1702_s17, 128  ;;  %p1878_p12 = scmp.lt.s32.totalorder %s1702_s17, %s1702_s17 }
  0x34   : > { %v1179_v9 = vadd.f32 %v667_v6, %v666_v5  ;;  %v672_v18 = vmul.f32 %v160_v17, %v160_v17  ;;  %v673_v21 = vmul.f32 %v161_v20, %v161_v20  ;;  %v674_v24 = vmul.f32 %v162_v23, %v162_v23  ;;  %v163_v26 = vld [vmem:[%s2037_s16 + $0x48] sm:$0xff]  ;;  %v164_v29 = vld [vmem:[%s2037_s16 + $0x50] sm:$0xff]  ;;  %v165_v32 = vld [vmem:[%s2037_s16 + $0x58] sm:$0xff]  ;;  %p1872_p9 = scmp.ne.s32.totalorder %s1702_s17, %s1871_s20  ;;  %p1879_p13 = scmp.lt.s32.totalorder %s1871_s20, %s1871_s20 }
  0x35   : > { %v675_v27 = vmul.f32 %v163_v26, %v163_v26  ;;  %v676_v30 = vmul.f32 %v164_v29, %v164_v29  ;;  %v677_v33 = vmul.f32 %v165_v32, %v165_v32  ;;  %v166_v35 = vld [vmem:[%s2037_s16 + $0x60] sm:$0xff]  ;;  %v167_v38 = vld [vmem:[%s2037_s16 + $0x68] sm:$0xff]  ;;  %v168_v41 = vld [vmem:[%s2037_s16 + $0x70] sm:$0xff] }
  0x36   : > { %v1180_v11 = vadd.f32 %v1179_v9, %v668_v7  ;;  %v678_v36 = vmul.f32 %v166_v35, %v166_v35  ;;  %v679_v39 = vmul.f32 %v167_v38, %v167_v38  ;;  %v680_v42 = vmul.f32 %v168_v41, %v168_v41  ;;  %v169_v44 = vld [vmem:[%s2037_s16 + $0x78] sm:$0xff]  ;;  %v170_v47 = vld [vmem:[%s2037_s16 + $0x80] sm:$0xff]  ;;  %v171_v50 = vld [vmem:[%s2037_s16 + $0x88] sm:$0xff]  ;;  %p1873_p10 = pnand %p1872_p9, %p2558_p7  ;;  %p1880_p0 = por %p1879_p13, %p1878_p12 }
  0x37   : > { %v681_v45 = vmul.f32 %v169_v44, %v169_v44  ;;  %v682_v48 = vmul.f32 %v170_v47, %v170_v47  ;;  %v683_v51 = vmul.f32 %v171_v50, %v171_v50  ;;  %v172_v53 = vld [vmem:[%s2037_s16 + $0x90] sm:$0xff]  ;;  %v173_v56 = vld [vmem:[%s2037_s16 + $0x98] sm:$0xff]  ;;  %v174_v59 = vld [vmem:[%s2037_s16 + $0xa0] sm:$0xff] }
  0x38   : > { %v1181_v13 = vadd.f32 %v1180_v11, %v669_v8  ;;  %v684_v54 = vmul.f32 %v172_v53, %v172_v53  ;;  %v685_v57 = vmul.f32 %v173_v56, %v173_v56  ;;  %v686_v60 = vmul.f32 %v174_v59, %v174_v59  ;;  %v175_v62 = vld [vmem:[%s2037_s16 + $0xa8] sm:$0xff]  ;;  %v176_v63 = vld [vmem:[%s2037_s16 + $0xb0] sm:$0xff]  ;;  %v177_v2 = vld [vmem:[%s2037_s16 + $0xb8] sm:$0xff]  ;;  %p1874_p11 = pneg %p1873_p10 }
  0x39   : > { %v687_v0 = vmul.f32 %v175_v62, %v175_v62  ;;  %v688_v3 = vmul.f32 %v176_v63, %v176_v63  ;;  %v178_v4 = vld [vmem:[%s2037_s16 + $0xc0] sm:$0xff]  ;;  %v689_v5 = vmul.f32 %v177_v2, %v177_v2  ;;  %v179_v7 = vld [vmem:[%s2037_s16 + $0xc8] sm:$0xff]  ;;  %v180_v10 = vld [vmem:[%s2037_s16 + $0xd0] sm:$0xff] }
  0x3a   : > { %v1182_v16 = vadd.f32 %v1181_v13, %v670_v12  ;;  %v690_v8 = vmul.f32 %v178_v4, %v178_v4  ;;  %v691_v11 = vmul.f32 %v179_v7, %v179_v7  ;;  %v181_v13 = vld [vmem:[%s2037_s16 + $0xd8] sm:$0xff]  ;;  %v692_v14 = vmul.f32 %v180_v10, %v180_v10  ;;  %p1881_p1 = pnand %p1880_p0, %p1874_p11 }
  0x3b   : > { %v693_v17 = vmul.f32 %v181_v13, %v181_v13 }
  0x3c   : > { %v1183_v19 = vadd.f32 %v1182_v16, %v671_v15  ;;  %v182_v16 = vld [vmem:[%s2037_s16 + $0xe0] sm:$0xff] }
  0x3d   : > { %v694_v20 = vmul.f32 %v182_v16, %v182_v16 }
  0x3e   : > { %v1184_v22 = vadd.f32 %v1183_v19, %v672_v18  ;;  %v183_v19 = vld [vmem:[%s2037_s16 + $0xe8] sm:$0xff] }
  0x3f   : > { %v695_v23 = vmul.f32 %v183_v19, %v183_v19 }
  0x40   : > { %v1185_v25 = vadd.f32 %v1184_v22, %v673_v21  ;;  %v184_v22 = vld [vmem:[%s2037_s16 + $0xf0] sm:$0xff] }
  0x41   : > { %v696_v26 = vmul.f32 %v184_v22, %v184_v22 }
  0x42   : > { %v1186_v28 = vadd.f32 %v1185_v25, %v674_v24  ;;  %v185_v25 = vld [vmem:[%s2037_s16 + $0xf8] sm:$0xff] }
  0x43   : > { %v697_v29 = vmul.f32 %v185_v25, %v185_v25 }
  0x44   : > { %v1187_v31 = vadd.f32 %v1186_v28, %v675_v27  ;;  %v186_v28 = vld [vmem:[%s2037_s16 + $0x100] sm:$0xff] }
  0x45   : > { %v698_v32 = vmul.f32 %v186_v28, %v186_v28 }
  0x46   : > { %v1188_v34 = vadd.f32 %v1187_v31, %v676_v30  ;;  %v187_v31 = vld [vmem:[%s2037_s16 + $0x108] sm:$0xff] }
  0x47   : > { %v699_v35 = vmul.f32 %v187_v31, %v187_v31 }
  0x48   : > { %v1189_v37 = vadd.f32 %v1188_v34, %v677_v33  ;;  %v188_v34 = vld [vmem:[%s2037_s16 + $0x110] sm:$0xff] }
  0x49   : > { %v700_v38 = vmul.f32 %v188_v34, %v188_v34 }
  0x4a   : > { %v1190_v40 = vadd.f32 %v1189_v37, %v678_v36  ;;  %v189_v37 = vld [vmem:[%s2037_s16 + $0x118] sm:$0xff] }
  0x4b   : > { %v701_v41 = vmul.f32 %v189_v37, %v189_v37 }
  0x4c   : > { %v1191_v43 = vadd.f32 %v1190_v40, %v679_v39  ;;  %v190_v40 = vld [vmem:[%s2037_s16 + $0x120] sm:$0xff] }
  0x4d   : > { %v702_v44 = vmul.f32 %v190_v40, %v190_v40 }
  0x4e   : > { %v1192_v46 = vadd.f32 %v1191_v43, %v680_v42  ;;  %v191_v43 = vld [vmem:[%s2037_s16 + $0x128] sm:$0xff] }
  0x4f   : > { %v703_v47 = vmul.f32 %v191_v43, %v191_v43 }
  0x50   : > { %v1193_v49 = vadd.f32 %v1192_v46, %v681_v45  ;;  %v192_v46 = vld [vmem:[%s2037_s16 + $0x130] sm:$0xff] }
  0x51   : > { %v704_v50 = vmul.f32 %v192_v46, %v192_v46 }
  0x52   : > { %v1194_v52 = vadd.f32 %v1193_v49, %v682_v48  ;;  %v193_v49 = vld [vmem:[%s2037_s16 + $0x138] sm:$0xff] }
  0x53   : > { %v705_v53 = vmul.f32 %v193_v49, %v193_v49 }
  0x54   : > { %v1195_v55 = vadd.f32 %v1194_v52, %v683_v51  ;;  %v194_v52 = vld [vmem:[%s2037_s16 + $0x140] sm:$0xff] }
  0x55   : > { %v706_v56 = vmul.f32 %v194_v52, %v194_v52 }
  0x56   : > { %v1196_v58 = vadd.f32 %v1195_v55, %v684_v54  ;;  %v195_v55 = vld [vmem:[%s2037_s16 + $0x148] sm:$0xff] }
  0x57   : > { %v707_v59 = vmul.f32 %v195_v55, %v195_v55 }
  0x58   : > { %v1197_v61 = vadd.f32 %v1196_v58, %v685_v57  ;;  %v196_v58 = vld [vmem:[%s2037_s16 + $0x150] sm:$0xff] }
  0x59   : > { %v708_v62 = vmul.f32 %v196_v58, %v196_v58 }
  0x5a   : > { %v1198_v1 = vadd.f32 %v1197_v61, %v686_v60  ;;  %v197_v61 = vld [vmem:[%s2037_s16 + $0x158] sm:$0xff] }
  0x5c   : > { %v1199_v6 = vadd.f32 %v1198_v1, %v687_v0  ;;  %v198_v0 = vld [vmem:[%s2037_s16 + $0x160] sm:$0xff]  ;;  %v709_v1 = vmul.f32 %v197_v61, %v197_v61 }
  0x5d   : > { %v710_v4 = vmul.f32 %v198_v0, %v198_v0 }
  0x5e   : > { %v1200_v9 = vadd.f32 %v1199_v6, %v688_v3  ;;  %v199_v3 = vld [vmem:[%s2037_s16 + $0x168] sm:$0xff]  ;;  %v200_v6 = vld [vmem:[%s2037_s16 + $0x170] sm:$0xff] }
  0x5f   : > { %v711_v7 = vmul.f32 %v199_v3, %v199_v3  ;;  %v712_v10 = vmul.f32 %v200_v6, %v200_v6 }
  0x60   : > { %v1201_v12 = vadd.f32 %v1200_v9, %v689_v5  ;;  %v201_v9 = vld [vmem:[%s2037_s16 + $0x178] sm:$0xff] }
  0x61   : > { %v713_v13 = vmul.f32 %v201_v9, %v201_v9 }
  0x62   : > { %v1202_v15 = vadd.f32 %v1201_v12, %v690_v8  ;;  %v202_v12 = vld [vmem:[%s2037_s16 + $0x180] sm:$0xff] }
  0x63   : > { %v714_v16 = vmul.f32 %v202_v12, %v202_v12 }
  0x64   : > { %v1203_v18 = vadd.f32 %v1202_v15, %v691_v11  ;;  %v203_v15 = vld [vmem:[%s2037_s16 + $0x188] sm:$0xff] }
  0x65   : > { %v715_v19 = vmul.f32 %v203_v15, %v203_v15 }
  0x66   : > { %v1204_v21 = vadd.f32 %v1203_v18, %v692_v14  ;;  %v204_v18 = vld [vmem:[%s2037_s16 + $0x190] sm:$0xff] }
  0x67   : > { %v716_v22 = vmul.f32 %v204_v18, %v204_v18 }
  0x68   : > { %v1205_v24 = vadd.f32 %v1204_v21, %v693_v17  ;;  %v205_v21 = vld [vmem:[%s2037_s16 + $0x198] sm:$0xff] }
  0x69   : > { %v717_v25 = vmul.f32 %v205_v21, %v205_v21 }
  0x6a   : > { %v1206_v27 = vadd.f32 %v1205_v24, %v694_v20  ;;  %v206_v24 = vld [vmem:[%s2037_s16 + $0x1a0] sm:$0xff] }
  0x6b   : > { %v718_v28 = vmul.f32 %v206_v24, %v206_v24 }
  0x6c   : > { %v1207_v30 = vadd.f32 %v1206_v27, %v695_v23  ;;  %v207_v27 = vld [vmem:[%s2037_s16 + $0x1a8] sm:$0xff] }
  0x6d   : > { %v719_v31 = vmul.f32 %v207_v27, %v207_v27 }
  0x6e   : > { %v1208_v33 = vadd.f32 %v1207_v30, %v696_v26  ;;  %v208_v30 = vld [vmem:[%s2037_s16 + $0x1b0] sm:$0xff] }
  0x6f   : > { %v720_v34 = vmul.f32 %v208_v30, %v208_v30 }
  0x70   : > { %v1209_v36 = vadd.f32 %v1208_v33, %v697_v29  ;;  %v209_v33 = vld [vmem:[%s2037_s16 + $0x1b8] sm:$0xff] }
  0x71   : > { %v721_v37 = vmul.f32 %v209_v33, %v209_v33 }
  0x72   : > { %v1210_v39 = vadd.f32 %v1209_v36, %v698_v32  ;;  %v210_v36 = vld [vmem:[%s2037_s16 + $0x1c0] sm:$0xff] }
  0x73   : > { %v722_v40 = vmul.f32 %v210_v36, %v210_v36 }
  0x74   : > { %v1211_v42 = vadd.f32 %v1210_v39, %v699_v35  ;;  %v211_v39 = vld [vmem:[%s2037_s16 + $0x1c8] sm:$0xff] }
  0x75   : > { %v723_v43 = vmul.f32 %v211_v39, %v211_v39 }
  0x76   : > { %v1212_v45 = vadd.f32 %v1211_v42, %v700_v38  ;;  %v212_v42 = vld [vmem:[%s2037_s16 + $0x1d0] sm:$0xff] }
  0x77   : > { %v724_v46 = vmul.f32 %v212_v42, %v212_v42 }
  0x78   : > { %v1213_v48 = vadd.f32 %v1212_v45, %v701_v41  ;;  %v213_v45 = vld [vmem:[%s2037_s16 + $0x1d8] sm:$0xff] }
  0x79   : > { %v725_v49 = vmul.f32 %v213_v45, %v213_v45 }
  0x7a   : > { %v1214_v51 = vadd.f32 %v1213_v48, %v702_v44  ;;  %v214_v48 = vld [vmem:[%s2037_s16 + $0x1e0] sm:$0xff] }
  0x7b   : > { %v726_v52 = vmul.f32 %v214_v48, %v214_v48 }
  0x7c   : > { %v1215_v54 = vadd.f32 %v1214_v51, %v703_v47  ;;  %v215_v51 = vld [vmem:[%s2037_s16 + $0x1e8] sm:$0xff] }
  0x7d   : > { %v727_v55 = vmul.f32 %v215_v51, %v215_v51 }
  0x7e   : > { %v1216_v57 = vadd.f32 %v1215_v54, %v704_v50  ;;  %v216_v54 = vld [vmem:[%s2037_s16 + $0x1f0] sm:$0xff] }
  0x7f   : > { %v728_v58 = vmul.f32 %v216_v54, %v216_v54 }
  0x80   : > { %v1217_v60 = vadd.f32 %v1216_v57, %v705_v53  ;;  %v217_v57 = vld [vmem:[%s2037_s16 + $0x1f8] sm:$0xff] }
  0x81   : > { %v729_v61 = vmul.f32 %v217_v57, %v217_v57 }
  0x82   : > { %v1218_v63 = vadd.f32 %v1217_v60, %v706_v56  ;;  %v218_v60 = vld [vmem:[%s2037_s16 + $0x200] sm:$0xff] }
  0x83   : > { %v730_v0 = vmul.f32 %v218_v60, %v218_v60 }
  0x84   : > { %v1219_v2 = vadd.f32 %v1218_v63, %v707_v59  ;;  %v219_v63 = vld [vmem:[%s2037_s16 + $0x208] sm:$0xff] }
  0x85   : > { %v731_v3 = vmul.f32 %v219_v63, %v219_v63 }
  0x86   : > { %v1220_v5 = vadd.f32 %v1219_v2, %v708_v62  ;;  %v220_v2 = vld [vmem:[%s2037_s16 + $0x210] sm:$0xff] }
  0x87   : > { %v732_v6 = vmul.f32 %v220_v2, %v220_v2 }
  0x88   : > { %v1221_v8 = vadd.f32 %v1220_v5, %v709_v1  ;;  %v221_v5 = vld [vmem:[%s2037_s16 + $0x218] sm:$0xff] }
  0x89   : > { %v733_v9 = vmul.f32 %v221_v5, %v221_v5 }
  0x8a   : > { %v1222_v11 = vadd.f32 %v1221_v8, %v710_v4  ;;  %v222_v8 = vld [vmem:[%s2037_s16 + $0x220] sm:$0xff] }
  0x8b   : > { %v734_v12 = vmul.f32 %v222_v8, %v222_v8 }
  0x8c   : > { %v1223_v14 = vadd.f32 %v1222_v11, %v711_v7  ;;  %v223_v11 = vld [vmem:[%s2037_s16 + $0x228] sm:$0xff] }
  0x8d   : > { %v735_v15 = vmul.f32 %v223_v11, %v223_v11 }
  0x8e   : > { %v1224_v17 = vadd.f32 %v1223_v14, %v712_v10  ;;  %v224_v14 = vld [vmem:[%s2037_s16 + $0x230] sm:$0xff] }
  0x8f   : > { %v736_v18 = vmul.f32 %v224_v14, %v224_v14 }
  0x90   : > { %v1225_v20 = vadd.f32 %v1224_v17, %v713_v13  ;;  %v225_v17 = vld [vmem:[%s2037_s16 + $0x238] sm:$0xff] }
  0x91   : > { %v737_v21 = vmul.f32 %v225_v17, %v225_v17 }
  0x92   : > { %v1226_v23 = vadd.f32 %v1225_v20, %v714_v16  ;;  %v226_v20 = vld [vmem:[%s2037_s16 + $0x240] sm:$0xff] }
  0x93   : > { %v738_v24 = vmul.f32 %v226_v20, %v226_v20 }
  0x94   : > { %v1227_v26 = vadd.f32 %v1226_v23, %v715_v19  ;;  %v227_v23 = vld [vmem:[%s2037_s16 + $0x248] sm:$0xff] }
  0x95   : > { %v739_v27 = vmul.f32 %v227_v23, %v227_v23 }
  0x96   : > { %v1228_v29 = vadd.f32 %v1227_v26, %v716_v22  ;;  %v228_v26 = vld [vmem:[%s2037_s16 + $0x250] sm:$0xff] }
  0x97   : > { %v740_v30 = vmul.f32 %v228_v26, %v228_v26 }
  0x98   : > { %v1229_v32 = vadd.f32 %v1228_v29, %v717_v25  ;;  %v229_v29 = vld [vmem:[%s2037_s16 + $0x258] sm:$0xff] }
  0x99   : > { %v741_v33 = vmul.f32 %v229_v29, %v229_v29 }
  0x9a   : > { %v1230_v35 = vadd.f32 %v1229_v32, %v718_v28  ;;  %v230_v32 = vld [vmem:[%s2037_s16 + $0x260] sm:$0xff] }
  0x9b   : > { %v742_v36 = vmul.f32 %v230_v32, %v230_v32 }
  0x9c   : > { %v1231_v38 = vadd.f32 %v1230_v35, %v719_v31  ;;  %v231_v35 = vld [vmem:[%s2037_s16 + $0x268] sm:$0xff] }
  0x9d   : > { %v743_v39 = vmul.f32 %v231_v35, %v231_v35 }
  0x9e   : > { %v1232_v41 = vadd.f32 %v1231_v38, %v720_v34  ;;  %v232_v38 = vld [vmem:[%s2037_s16 + $0x270] sm:$0xff] }
  0x9f   : > { %v744_v42 = vmul.f32 %v232_v38, %v232_v38 }
  0xa0   : > { %v1233_v44 = vadd.f32 %v1232_v41, %v721_v37  ;;  %v233_v41 = vld [vmem:[%s2037_s16 + $0x278] sm:$0xff] }
  0xa1   : > { %v745_v45 = vmul.f32 %v233_v41, %v233_v41 }
  0xa2   : > { %v1234_v47 = vadd.f32 %v1233_v44, %v722_v40  ;;  %v234_v44 = vld [vmem:[%s2037_s16 + $0x280] sm:$0xff] }
  0xa3   : > { %v746_v48 = vmul.f32 %v234_v44, %v234_v44 }
  0xa4   : > { %v1235_v50 = vadd.f32 %v1234_v47, %v723_v43  ;;  %v235_v47 = vld [vmem:[%s2037_s16 + $0x288] sm:$0xff] }
  0xa5   : > { %v747_v51 = vmul.f32 %v235_v47, %v235_v47 }
  0xa6   : > { %v1236_v53 = vadd.f32 %v1235_v50, %v724_v46  ;;  %v236_v50 = vld [vmem:[%s2037_s16 + $0x290] sm:$0xff] }
  0xa7   : > { %v748_v54 = vmul.f32 %v236_v50, %v236_v50 }
  0xa8   : > { %v1237_v56 = vadd.f32 %v1236_v53, %v725_v49  ;;  %v237_v53 = vld [vmem:[%s2037_s16 + $0x298] sm:$0xff] }
  0xa9   : > { %v749_v57 = vmul.f32 %v237_v53, %v237_v53 }
  0xaa   : > { %v1238_v59 = vadd.f32 %v1237_v56, %v726_v52  ;;  %v238_v56 = vld [vmem:[%s2037_s16 + $0x2a0] sm:$0xff] }
  0xab   : > { %v750_v60 = vmul.f32 %v238_v56, %v238_v56 }
  0xac   : > { %v1239_v62 = vadd.f32 %v1238_v59, %v727_v55  ;;  %v239_v59 = vld [vmem:[%s2037_s16 + $0x2a8] sm:$0xff] }
  0xad   : > { %v751_v63 = vmul.f32 %v239_v59, %v239_v59 }
  0xae   : > { %v1240_v1 = vadd.f32 %v1239_v62, %v728_v58  ;;  %v240_v62 = vld [vmem:[%s2037_s16 + $0x2b0] sm:$0xff] }
  0xaf   : > { %v752_v2 = vmul.f32 %v240_v62, %v240_v62 }
  0xb0   : > { %v1241_v4 = vadd.f32 %v1240_v1, %v729_v61  ;;  %v241_v1 = vld [vmem:[%s2037_s16 + $0x2b8] sm:$0xff] }
  0xb1   : > { %v753_v5 = vmul.f32 %v241_v1, %v241_v1 }
  0xb2   : > { %v1242_v7 = vadd.f32 %v1241_v4, %v730_v0  ;;  %v242_v4 = vld [vmem:[%s2037_s16 + $0x2c0] sm:$0xff] }
  0xb3   : > { %v754_v8 = vmul.f32 %v242_v4, %v242_v4 }
  0xb4   : > { %v1243_v10 = vadd.f32 %v1242_v7, %v731_v3  ;;  %v243_v7 = vld [vmem:[%s2037_s16 + $0x2c8] sm:$0xff] }
  0xb5   : > { %v755_v11 = vmul.f32 %v243_v7, %v243_v7 }
  0xb6   : > { %v1244_v13 = vadd.f32 %v1243_v10, %v732_v6  ;;  %v244_v10 = vld [vmem:[%s2037_s16 + $0x2d0] sm:$0xff] }
  0xb7   : > { %v756_v14 = vmul.f32 %v244_v10, %v244_v10 }
  0xb8   : > { %v1245_v16 = vadd.f32 %v1244_v13, %v733_v9  ;;  %v245_v13 = vld [vmem:[%s2037_s16 + $0x2d8] sm:$0xff] }
  0xb9   : > { %v757_v17 = vmul.f32 %v245_v13, %v245_v13 }
  0xba   : > { %v1246_v19 = vadd.f32 %v1245_v16, %v734_v12  ;;  %v246_v16 = vld [vmem:[%s2037_s16 + $0x2e0] sm:$0xff] }
  0xbb   : > { %v758_v20 = vmul.f32 %v246_v16, %v246_v16 }
  0xbc   : > { %v1247_v22 = vadd.f32 %v1246_v19, %v735_v15  ;;  %v247_v19 = vld [vmem:[%s2037_s16 + $0x2e8] sm:$0xff] }
  0xbd   : > { %v759_v23 = vmul.f32 %v247_v19, %v247_v19 }
  0xbe   : > { %v1248_v25 = vadd.f32 %v1247_v22, %v736_v18  ;;  %v248_v22 = vld [vmem:[%s2037_s16 + $0x2f0] sm:$0xff] }
  0xbf   : > { %v760_v26 = vmul.f32 %v248_v22, %v248_v22 }
  0xc0   : > { %v1249_v28 = vadd.f32 %v1248_v25, %v737_v21  ;;  %v249_v25 = vld [vmem:[%s2037_s16 + $0x2f8] sm:$0xff] }
  0xc1   : > { %v761_v29 = vmul.f32 %v249_v25, %v249_v25 }
  0xc2   : > { %v1250_v31 = vadd.f32 %v1249_v28, %v738_v24  ;;  %v250_v28 = vld [vmem:[%s2037_s16 + $0x300] sm:$0xff] }
  0xc3   : > { %v762_v32 = vmul.f32 %v250_v28, %v250_v28 }
  0xc4   : > { %v1251_v34 = vadd.f32 %v1250_v31, %v739_v27  ;;  %v251_v31 = vld [vmem:[%s2037_s16 + $0x308] sm:$0xff] }
  0xc5   : > { %v763_v35 = vmul.f32 %v251_v31, %v251_v31 }
  0xc6   : > { %v1252_v37 = vadd.f32 %v1251_v34, %v740_v30  ;;  %v252_v34 = vld [vmem:[%s2037_s16 + $0x310] sm:$0xff] }
  0xc7   : > { %v764_v38 = vmul.f32 %v252_v34, %v252_v34 }
  0xc8   : > { %v1253_v40 = vadd.f32 %v1252_v37, %v741_v33  ;;  %v253_v37 = vld [vmem:[%s2037_s16 + $0x318] sm:$0xff] }
  0xc9   : > { %v765_v41 = vmul.f32 %v253_v37, %v253_v37 }
  0xca   : > { %v1254_v43 = vadd.f32 %v1253_v40, %v742_v36  ;;  %v254_v40 = vld [vmem:[%s2037_s16 + $0x320] sm:$0xff] }
  0xcb   : > { %v766_v44 = vmul.f32 %v254_v40, %v254_v40 }
  0xcc   : > { %v1255_v46 = vadd.f32 %v1254_v43, %v743_v39  ;;  %v255_v43 = vld [vmem:[%s2037_s16 + $0x328] sm:$0xff] }
  0xcd   : > { %v767_v47 = vmul.f32 %v255_v43, %v255_v43 }
  0xce   : > { %v1256_v49 = vadd.f32 %v1255_v46, %v744_v42  ;;  %v256_v46 = vld [vmem:[%s2037_s16 + $0x330] sm:$0xff] }
  0xcf   : > { %v768_v50 = vmul.f32 %v256_v46, %v256_v46 }
  0xd0   : > { %v1257_v52 = vadd.f32 %v1256_v49, %v745_v45  ;;  %v257_v49 = vld [vmem:[%s2037_s16 + $0x338] sm:$0xff] }
  0xd1   : > { %v769_v53 = vmul.f32 %v257_v49, %v257_v49 }
  0xd2   : > { %v1258_v55 = vadd.f32 %v1257_v52, %v746_v48  ;;  %v258_v52 = vld [vmem:[%s2037_s16 + $0x340] sm:$0xff] }
  0xd3   : > { %v770_v56 = vmul.f32 %v258_v52, %v258_v52 }
  0xd4   : > { %v1259_v58 = vadd.f32 %v1258_v55, %v747_v51  ;;  %v259_v55 = vld [vmem:[%s2037_s16 + $0x348] sm:$0xff] }
  0xd5   : > { %v771_v59 = vmul.f32 %v259_v55, %v259_v55 }
  0xd6   : > { %v1260_v61 = vadd.f32 %v1259_v58, %v748_v54  ;;  %v260_v58 = vld [vmem:[%s2037_s16 + $0x350] sm:$0xff] }
  0xd7   : > { %v772_v62 = vmul.f32 %v260_v58, %v260_v58 }
  0xd8   : > { %v1261_v0 = vadd.f32 %v1260_v61, %v749_v57  ;;  %v261_v61 = vld [vmem:[%s2037_s16 + $0x358] sm:$0xff] }
  0xd9   : > { %v773_v1 = vmul.f32 %v261_v61, %v261_v61 }
  0xda   : > { %v1262_v3 = vadd.f32 %v1261_v0, %v750_v60  ;;  %v262_v0 = vld [vmem:[%s2037_s16 + $0x360] sm:$0xff] }
  0xdb   : > { %v774_v4 = vmul.f32 %v262_v0, %v262_v0 }
  0xdc   : > { %v1263_v6 = vadd.f32 %v1262_v3, %v751_v63  ;;  %v263_v3 = vld [vmem:[%s2037_s16 + $0x368] sm:$0xff] }
  0xdd   : > { %v775_v7 = vmul.f32 %v263_v3, %v263_v3 }
  0xde   : > { %v1264_v9 = vadd.f32 %v1263_v6, %v752_v2  ;;  %v264_v6 = vld [vmem:[%s2037_s16 + $0x370] sm:$0xff] }
  0xdf   : > { %v776_v10 = vmul.f32 %v264_v6, %v264_v6 }
  0xe0   : > { %v1265_v12 = vadd.f32 %v1264_v9, %v753_v5  ;;  %v265_v9 = vld [vmem:[%s2037_s16 + $0x378] sm:$0xff] }
  0xe1   : > { %v777_v13 = vmul.f32 %v265_v9, %v265_v9 }
  0xe2   : > { %v1266_v15 = vadd.f32 %v1265_v12, %v754_v8  ;;  %v266_v12 = vld [vmem:[%s2037_s16 + $0x380] sm:$0xff] }
  0xe3   : > { %v778_v16 = vmul.f32 %v266_v12, %v266_v12 }
  0xe4   : > { %v1267_v18 = vadd.f32 %v1266_v15, %v755_v11  ;;  %v267_v15 = vld [vmem:[%s2037_s16 + $0x388] sm:$0xff] }
  0xe5   : > { %v779_v19 = vmul.f32 %v267_v15, %v267_v15 }
  0xe6   : > { %v1268_v21 = vadd.f32 %v1267_v18, %v756_v14  ;;  %v268_v18 = vld [vmem:[%s2037_s16 + $0x390] sm:$0xff] }
  0xe7   : > { %v780_v22 = vmul.f32 %v268_v18, %v268_v18 }
  0xe8   : > { %v1269_v24 = vadd.f32 %v1268_v21, %v757_v17  ;;  %v269_v21 = vld [vmem:[%s2037_s16 + $0x398] sm:$0xff] }
  0xe9   : > { %v781_v25 = vmul.f32 %v269_v21, %v269_v21 }
  0xea   : > { %v1270_v27 = vadd.f32 %v1269_v24, %v758_v20  ;;  %v270_v24 = vld [vmem:[%s2037_s16 + $0x3a0] sm:$0xff] }
  0xeb   : > { %v782_v28 = vmul.f32 %v270_v24, %v270_v24 }
  0xec   : > { %v1271_v30 = vadd.f32 %v1270_v27, %v759_v23  ;;  %v271_v27 = vld [vmem:[%s2037_s16 + $0x3a8] sm:$0xff] }
  0xed   : > { %v783_v31 = vmul.f32 %v271_v27, %v271_v27 }
  0xee   : > { %v1272_v33 = vadd.f32 %v1271_v30, %v760_v26  ;;  %v272_v30 = vld [vmem:[%s2037_s16 + $0x3b0] sm:$0xff] }
  0xef   : > { %v784_v34 = vmul.f32 %v272_v30, %v272_v30 }
  0xf0   : > { %v1273_v36 = vadd.f32 %v1272_v33, %v761_v29  ;;  %v273_v33 = vld [vmem:[%s2037_s16 + $0x3b8] sm:$0xff] }
  0xf1   : > { %v785_v37 = vmul.f32 %v273_v33, %v273_v33 }
  0xf2   : > { %v1274_v39 = vadd.f32 %v1273_v36, %v762_v32  ;;  %v274_v36 = vld [vmem:[%s2037_s16 + $0x3c0] sm:$0xff] }
  0xf3   : > { %v786_v40 = vmul.f32 %v274_v36, %v274_v36 }
  0xf4   : > { %v1275_v42 = vadd.f32 %v1274_v39, %v763_v35  ;;  %v275_v39 = vld [vmem:[%s2037_s16 + $0x3c8] sm:$0xff] }
  0xf5   : > { %v787_v43 = vmul.f32 %v275_v39, %v275_v39 }
  0xf6   : > { %v1276_v45 = vadd.f32 %v1275_v42, %v764_v38  ;;  %v276_v42 = vld [vmem:[%s2037_s16 + $0x3d0] sm:$0xff] }
  0xf7   : > { %v788_v46 = vmul.f32 %v276_v42, %v276_v42 }
  0xf8   : > { %v1277_v48 = vadd.f32 %v1276_v45, %v765_v41  ;;  %v277_v45 = vld [vmem:[%s2037_s16 + $0x3d8] sm:$0xff] }
  0xf9   : > { %v789_v49 = vmul.f32 %v277_v45, %v277_v45 }
  0xfa   : > { %v1278_v51 = vadd.f32 %v1277_v48, %v766_v44  ;;  %v278_v48 = vld [vmem:[%s2037_s16 + $0x3e0] sm:$0xff] }
  0xfb   : > { %v790_v52 = vmul.f32 %v278_v48, %v278_v48 }
  0xfc   : > { %v1279_v54 = vadd.f32 %v1278_v51, %v767_v47  ;;  %v279_v51 = vld [vmem:[%s2037_s16 + $0x3e8] sm:$0xff] }
  0xfd   : > { %v791_v55 = vmul.f32 %v279_v51, %v279_v51 }
  0xfe   : > { %v1280_v57 = vadd.f32 %v1279_v54, %v768_v50  ;;  %v280_v54 = vld [vmem:[%s2037_s16 + $0x3f0] sm:$0xff] }
  0xff   : > { %v792_v58 = vmul.f32 %v280_v54, %v280_v54 }
 0x100   : > { %v1281_v60 = vadd.f32 %v1280_v57, %v769_v53  ;;  %v281_v57 = vld [vmem:[%s2037_s16 + $0x3f8] sm:$0xff] }
 0x101   : > { %v793_v61 = vmul.f32 %v281_v57, %v281_v57 }
 0x102   : > { %v1282_v63 = vadd.f32 %v1281_v60, %v770_v56  ;;  %v282_v60 = vld [vmem:[%s2037_s16 + $0x400] sm:$0xff] }
 0x103   : > { %v794_v0 = vmul.f32 %v282_v60, %v282_v60 }
 0x104   : > { %v1283_v2 = vadd.f32 %v1282_v63, %v771_v59  ;;  %v283_v63 = vld [vmem:[%s2037_s16 + $0x408] sm:$0xff] }
 0x105   : > { %v795_v3 = vmul.f32 %v283_v63, %v283_v63 }
 0x106   : > { %v1284_v5 = vadd.f32 %v1283_v2, %v772_v62  ;;  %v284_v2 = vld [vmem:[%s2037_s16 + $0x410] sm:$0xff] }
 0x107   : > { %v796_v6 = vmul.f32 %v284_v2, %v284_v2 }
 0x108   : > { %v1285_v8 = vadd.f32 %v1284_v5, %v773_v1  ;;  %v285_v5 = vld [vmem:[%s2037_s16 + $0x418] sm:$0xff] }
 0x109   : > { %v797_v9 = vmul.f32 %v285_v5, %v285_v5 }
 0x10a   : > { %v1286_v11 = vadd.f32 %v1285_v8, %v774_v4  ;;  %v286_v8 = vld [vmem:[%s2037_s16 + $0x420] sm:$0xff] }
 0x10b   : > { %v798_v12 = vmul.f32 %v286_v8, %v286_v8 }
 0x10c   : > { %v1287_v14 = vadd.f32 %v1286_v11, %v775_v7  ;;  %v287_v11 = vld [vmem:[%s2037_s16 + $0x428] sm:$0xff] }
 0x10d   : > { %v799_v15 = vmul.f32 %v287_v11, %v287_v11 }
 0x10e   : > { %v1288_v17 = vadd.f32 %v1287_v14, %v776_v10  ;;  %v288_v14 = vld [vmem:[%s2037_s16 + $0x430] sm:$0xff] }
 0x10f   : > { %v800_v18 = vmul.f32 %v288_v14, %v288_v14 }
 0x110   : > { %v1289_v20 = vadd.f32 %v1288_v17, %v777_v13  ;;  %v289_v17 = vld [vmem:[%s2037_s16 + $0x438] sm:$0xff] }
 0x111   : > { %v801_v21 = vmul.f32 %v289_v17, %v289_v17 }
 0x112   : > { %v1290_v23 = vadd.f32 %v1289_v20, %v778_v16  ;;  %v290_v20 = vld [vmem:[%s2037_s16 + $0x440] sm:$0xff] }
 0x113   : > { %v802_v24 = vmul.f32 %v290_v20, %v290_v20 }
 0x114   : > { %v1291_v26 = vadd.f32 %v1290_v23, %v779_v19  ;;  %v291_v23 = vld [vmem:[%s2037_s16 + $0x448] sm:$0xff] }
 0x115   : > { %v803_v27 = vmul.f32 %v291_v23, %v291_v23 }
 0x116   : > { %v1292_v29 = vadd.f32 %v1291_v26, %v780_v22  ;;  %v292_v26 = vld [vmem:[%s2037_s16 + $0x450] sm:$0xff] }
 0x117   : > { %v804_v30 = vmul.f32 %v292_v26, %v292_v26 }
 0x118   : > { %v1293_v32 = vadd.f32 %v1292_v29, %v781_v25  ;;  %v293_v29 = vld [vmem:[%s2037_s16 + $0x458] sm:$0xff] }
 0x119   : > { %v805_v33 = vmul.f32 %v293_v29, %v293_v29 }
 0x11a   : > { %v1294_v35 = vadd.f32 %v1293_v32, %v782_v28  ;;  %v294_v32 = vld [vmem:[%s2037_s16 + $0x460] sm:$0xff] }
 0x11b   : > { %v806_v36 = vmul.f32 %v294_v32, %v294_v32 }
 0x11c   : > { %v1295_v38 = vadd.f32 %v1294_v35, %v783_v31  ;;  %v295_v35 = vld [vmem:[%s2037_s16 + $0x468] sm:$0xff] }
 0x11d   : > { %v807_v39 = vmul.f32 %v295_v35, %v295_v35 }
 0x11e   : > { %v1296_v41 = vadd.f32 %v1295_v38, %v784_v34  ;;  %v296_v38 = vld [vmem:[%s2037_s16 + $0x470] sm:$0xff] }
 0x11f   : > { %v808_v42 = vmul.f32 %v296_v38, %v296_v38 }
 0x120   : > { %v1297_v44 = vadd.f32 %v1296_v41, %v785_v37  ;;  %v297_v41 = vld [vmem:[%s2037_s16 + $0x478] sm:$0xff] }
 0x121   : > { %v809_v45 = vmul.f32 %v297_v41, %v297_v41 }
 0x122   : > { %v1298_v47 = vadd.f32 %v1297_v44, %v786_v40  ;;  %v298_v44 = vld [vmem:[%s2037_s16 + $0x480] sm:$0xff] }
 0x123   : > { %v810_v48 = vmul.f32 %v298_v44, %v298_v44 }
 0x124   : > { %v1299_v50 = vadd.f32 %v1298_v47, %v787_v43  ;;  %v299_v47 = vld [vmem:[%s2037_s16 + $0x488] sm:$0xff] }
 0x125   : > { %v811_v51 = vmul.f32 %v299_v47, %v299_v47 }
 0x126   : > { %v1300_v53 = vadd.f32 %v1299_v50, %v788_v46  ;;  %v300_v50 = vld [vmem:[%s2037_s16 + $0x490] sm:$0xff] }
 0x127   : > { %v812_v54 = vmul.f32 %v300_v50, %v300_v50 }
 0x128   : > { %v1301_v56 = vadd.f32 %v1300_v53, %v789_v49  ;;  %v301_v53 = vld [vmem:[%s2037_s16 + $0x498] sm:$0xff] }
 0x129   : > { %v813_v57 = vmul.f32 %v301_v53, %v301_v53 }
 0x12a   : > { %v1302_v59 = vadd.f32 %v1301_v56, %v790_v52  ;;  %v302_v56 = vld [vmem:[%s2037_s16 + $0x4a0] sm:$0xff] }
 0x12b   : > { %v814_v60 = vmul.f32 %v302_v56, %v302_v56 }
 0x12c   : > { %v1303_v62 = vadd.f32 %v1302_v59, %v791_v55  ;;  %v303_v59 = vld [vmem:[%s2037_s16 + $0x4a8] sm:$0xff] }
 0x12d   : > { %v815_v63 = vmul.f32 %v303_v59, %v303_v59 }
 0x12e   : > { %v1304_v1 = vadd.f32 %v1303_v62, %v792_v58  ;;  %v304_v62 = vld [vmem:[%s2037_s16 + $0x4b0] sm:$0xff] }
 0x12f   : > { %v816_v2 = vmul.f32 %v304_v62, %v304_v62 }
 0x130   : > { %v1305_v4 = vadd.f32 %v1304_v1, %v793_v61  ;;  %v305_v1 = vld [vmem:[%s2037_s16 + $0x4b8] sm:$0xff] }
 0x131   : > { %v817_v5 = vmul.f32 %v305_v1, %v305_v1 }
 0x132   : > { %v1306_v7 = vadd.f32 %v1305_v4, %v794_v0  ;;  %v306_v4 = vld [vmem:[%s2037_s16 + $0x4c0] sm:$0xff] }
 0x133   : > { %v818_v8 = vmul.f32 %v306_v4, %v306_v4 }
 0x134   : > { %v1307_v10 = vadd.f32 %v1306_v7, %v795_v3  ;;  %v307_v7 = vld [vmem:[%s2037_s16 + $0x4c8] sm:$0xff] }
 0x135   : > { %v819_v11 = vmul.f32 %v307_v7, %v307_v7 }
 0x136   : > { %v1308_v13 = vadd.f32 %v1307_v10, %v796_v6  ;;  %v308_v10 = vld [vmem:[%s2037_s16 + $0x4d0] sm:$0xff] }
 0x137   : > { %v820_v14 = vmul.f32 %v308_v10, %v308_v10 }
 0x138   : > { %v1309_v16 = vadd.f32 %v1308_v13, %v797_v9  ;;  %v309_v13 = vld [vmem:[%s2037_s16 + $0x4d8] sm:$0xff] }
 0x139   : > { %v821_v17 = vmul.f32 %v309_v13, %v309_v13 }
 0x13a   : > { %v1310_v19 = vadd.f32 %v1309_v16, %v798_v12  ;;  %v310_v16 = vld [vmem:[%s2037_s16 + $0x4e0] sm:$0xff] }
 0x13b   : > { %v822_v20 = vmul.f32 %v310_v16, %v310_v16 }
 0x13c   : > { %v1311_v22 = vadd.f32 %v1310_v19, %v799_v15  ;;  %v311_v19 = vld [vmem:[%s2037_s16 + $0x4e8] sm:$0xff] }
 0x13d   : > { %v823_v23 = vmul.f32 %v311_v19, %v311_v19 }
 0x13e   : > { %v1312_v25 = vadd.f32 %v1311_v22, %v800_v18  ;;  %v312_v22 = vld [vmem:[%s2037_s16 + $0x4f0] sm:$0xff] }
 0x13f   : > { %v824_v26 = vmul.f32 %v312_v22, %v312_v22 }
 0x140   : > { %v1313_v28 = vadd.f32 %v1312_v25, %v801_v21  ;;  %v313_v25 = vld [vmem:[%s2037_s16 + $0x4f8] sm:$0xff] }
 0x141   : > { %v825_v29 = vmul.f32 %v313_v25, %v313_v25 }
 0x142   : > { %v1314_v31 = vadd.f32 %v1313_v28, %v802_v24  ;;  %v314_v28 = vld [vmem:[%s2037_s16 + $0x500] sm:$0xff] }
 0x143   : > { %v826_v32 = vmul.f32 %v314_v28, %v314_v28 }
 0x144   : > { %v1315_v34 = vadd.f32 %v1314_v31, %v803_v27  ;;  %v315_v31 = vld [vmem:[%s2037_s16 + $0x508] sm:$0xff] }
 0x145   : > { %v827_v35 = vmul.f32 %v315_v31, %v315_v31 }
 0x146   : > { %v1316_v37 = vadd.f32 %v1315_v34, %v804_v30  ;;  %v316_v34 = vld [vmem:[%s2037_s16 + $0x510] sm:$0xff] }
 0x147   : > { %v828_v38 = vmul.f32 %v316_v34, %v316_v34 }
 0x148   : > { %v1317_v40 = vadd.f32 %v1316_v37, %v805_v33  ;;  %v317_v37 = vld [vmem:[%s2037_s16 + $0x518] sm:$0xff] }
 0x149   : > { %v829_v41 = vmul.f32 %v317_v37, %v317_v37 }
 0x14a   : > { %v1318_v43 = vadd.f32 %v1317_v40, %v806_v36  ;;  %v318_v40 = vld [vmem:[%s2037_s16 + $0x520] sm:$0xff] }
 0x14b   : > { %v830_v44 = vmul.f32 %v318_v40, %v318_v40 }
 0x14c   : > { %v1319_v46 = vadd.f32 %v1318_v43, %v807_v39  ;;  %v319_v43 = vld [vmem:[%s2037_s16 + $0x528] sm:$0xff] }
 0x14d   : > { %v831_v47 = vmul.f32 %v319_v43, %v319_v43 }
 0x14e   : > { %v1320_v49 = vadd.f32 %v1319_v46, %v808_v42  ;;  %v320_v46 = vld [vmem:[%s2037_s16 + $0x530] sm:$0xff] }
 0x14f   : > { %v832_v50 = vmul.f32 %v320_v46, %v320_v46 }
 0x150   : > { %v1321_v52 = vadd.f32 %v1320_v49, %v809_v45  ;;  %v321_v49 = vld [vmem:[%s2037_s16 + $0x538] sm:$0xff] }
 0x151   : > { %v833_v53 = vmul.f32 %v321_v49, %v321_v49 }
 0x152   : > { %v1322_v55 = vadd.f32 %v1321_v52, %v810_v48  ;;  %v322_v52 = vld [vmem:[%s2037_s16 + $0x540] sm:$0xff] }
 0x153   : > { %v834_v56 = vmul.f32 %v322_v52, %v322_v52 }
 0x154   : > { %v1323_v58 = vadd.f32 %v1322_v55, %v811_v51  ;;  %v323_v55 = vld [vmem:[%s2037_s16 + $0x548] sm:$0xff] }
 0x155   : > { %v835_v59 = vmul.f32 %v323_v55, %v323_v55 }
 0x156   : > { %v1324_v61 = vadd.f32 %v1323_v58, %v812_v54  ;;  %v324_v58 = vld [vmem:[%s2037_s16 + $0x550] sm:$0xff] }
 0x157   : > { %v836_v62 = vmul.f32 %v324_v58, %v324_v58 }
 0x158   : > { %v1325_v0 = vadd.f32 %v1324_v61, %v813_v57  ;;  %v325_v61 = vld [vmem:[%s2037_s16 + $0x558] sm:$0xff] }
 0x159   : > { %v837_v1 = vmul.f32 %v325_v61, %v325_v61 }
 0x15a   : > { %v1326_v3 = vadd.f32 %v1325_v0, %v814_v60  ;;  %v326_v0 = vld [vmem:[%s2037_s16 + $0x560] sm:$0xff] }
 0x15b   : > { %v838_v4 = vmul.f32 %v326_v0, %v326_v0 }
 0x15c   : > { %v1327_v6 = vadd.f32 %v1326_v3, %v815_v63  ;;  %v327_v3 = vld [vmem:[%s2037_s16 + $0x568] sm:$0xff] }
 0x15d   : > { %v839_v7 = vmul.f32 %v327_v3, %v327_v3 }
 0x15e   : > { %v1328_v9 = vadd.f32 %v1327_v6, %v816_v2  ;;  %v328_v6 = vld [vmem:[%s2037_s16 + $0x570] sm:$0xff] }
 0x15f   : > { %v840_v10 = vmul.f32 %v328_v6, %v328_v6 }
 0x160   : > { %v1329_v12 = vadd.f32 %v1328_v9, %v817_v5  ;;  %v329_v9 = vld [vmem:[%s2037_s16 + $0x578] sm:$0xff] }
 0x161   : > { %v841_v13 = vmul.f32 %v329_v9, %v329_v9 }
 0x162   : > { %v1330_v15 = vadd.f32 %v1329_v12, %v818_v8  ;;  %v330_v12 = vld [vmem:[%s2037_s16 + $0x580] sm:$0xff] }
 0x163   : > { %v842_v16 = vmul.f32 %v330_v12, %v330_v12 }
 0x164   : > { %v1331_v18 = vadd.f32 %v1330_v15, %v819_v11  ;;  %v331_v15 = vld [vmem:[%s2037_s16 + $0x588] sm:$0xff] }
 0x165   : > { %v843_v19 = vmul.f32 %v331_v15, %v331_v15 }
 0x166   : > { %v1332_v21 = vadd.f32 %v1331_v18, %v820_v14  ;;  %v332_v18 = vld [vmem:[%s2037_s16 + $0x590] sm:$0xff] }
 0x167   : > { %v844_v22 = vmul.f32 %v332_v18, %v332_v18 }
 0x168   : > { %v1333_v24 = vadd.f32 %v1332_v21, %v821_v17  ;;  %v333_v21 = vld [vmem:[%s2037_s16 + $0x598] sm:$0xff] }
 0x169   : > { %v845_v25 = vmul.f32 %v333_v21, %v333_v21 }
 0x16a   : > { %v1334_v27 = vadd.f32 %v1333_v24, %v822_v20  ;;  %v334_v24 = vld [vmem:[%s2037_s16 + $0x5a0] sm:$0xff] }
 0x16b   : > { %v846_v28 = vmul.f32 %v334_v24, %v334_v24 }
 0x16c   : > { %v1335_v30 = vadd.f32 %v1334_v27, %v823_v23  ;;  %v335_v27 = vld [vmem:[%s2037_s16 + $0x5a8] sm:$0xff] }
 0x16d   : > { %v847_v31 = vmul.f32 %v335_v27, %v335_v27 }
 0x16e   : > { %v1336_v33 = vadd.f32 %v1335_v30, %v824_v26  ;;  %v336_v30 = vld [vmem:[%s2037_s16 + $0x5b0] sm:$0xff] }
 0x16f   : > { %v848_v34 = vmul.f32 %v336_v30, %v336_v30 }
 0x170   : > { %v1337_v36 = vadd.f32 %v1336_v33, %v825_v29  ;;  %v337_v33 = vld [vmem:[%s2037_s16 + $0x5b8] sm:$0xff] }
 0x171   : > { %v849_v37 = vmul.f32 %v337_v33, %v337_v33 }
 0x172   : > { %v1338_v39 = vadd.f32 %v1337_v36, %v826_v32  ;;  %v338_v36 = vld [vmem:[%s2037_s16 + $0x5c0] sm:$0xff] }
 0x173   : > { %v850_v40 = vmul.f32 %v338_v36, %v338_v36 }
 0x174   : > { %v1339_v42 = vadd.f32 %v1338_v39, %v827_v35  ;;  %v339_v39 = vld [vmem:[%s2037_s16 + $0x5c8] sm:$0xff] }
 0x175   : > { %v851_v43 = vmul.f32 %v339_v39, %v339_v39 }
 0x176   : > { %v1340_v45 = vadd.f32 %v1339_v42, %v828_v38  ;;  %v340_v42 = vld [vmem:[%s2037_s16 + $0x5d0] sm:$0xff] }
 0x177   : > { %v852_v46 = vmul.f32 %v340_v42, %v340_v42 }
 0x178   : > { %v1341_v48 = vadd.f32 %v1340_v45, %v829_v41  ;;  %v341_v45 = vld [vmem:[%s2037_s16 + $0x5d8] sm:$0xff] }
 0x179   : > { %v853_v49 = vmul.f32 %v341_v45, %v341_v45 }
 0x17a   : > { %v1342_v51 = vadd.f32 %v1341_v48, %v830_v44  ;;  %v342_v48 = vld [vmem:[%s2037_s16 + $0x5e0] sm:$0xff] }
 0x17b   : > { %v854_v52 = vmul.f32 %v342_v48, %v342_v48 }
 0x17c   : > { %v1343_v54 = vadd.f32 %v1342_v51, %v831_v47  ;;  %v343_v51 = vld [vmem:[%s2037_s16 + $0x5e8] sm:$0xff] }
 0x17d   : > { %v855_v55 = vmul.f32 %v343_v51, %v343_v51 }
 0x17e   : > { %v1344_v57 = vadd.f32 %v1343_v54, %v832_v50  ;;  %v344_v54 = vld [vmem:[%s2037_s16 + $0x5f0] sm:$0xff] }
 0x17f   : > { %v856_v58 = vmul.f32 %v344_v54, %v344_v54 }
 0x180   : > { %v1345_v60 = vadd.f32 %v1344_v57, %v833_v53  ;;  %v345_v57 = vld [vmem:[%s2037_s16 + $0x5f8] sm:$0xff] }
 0x181   : > { %v857_v61 = vmul.f32 %v345_v57, %v345_v57 }
 0x182   : > { %v1346_v63 = vadd.f32 %v1345_v60, %v834_v56  ;;  %v346_v60 = vld [vmem:[%s2037_s16 + $0x600] sm:$0xff] }
 0x183   : > { %v858_v0 = vmul.f32 %v346_v60, %v346_v60 }
 0x184   : > { %v1347_v2 = vadd.f32 %v1346_v63, %v835_v59  ;;  %v347_v63 = vld [vmem:[%s2037_s16 + $0x608] sm:$0xff] }
 0x185   : > { %v859_v3 = vmul.f32 %v347_v63, %v347_v63 }
 0x186   : > { %v1348_v5 = vadd.f32 %v1347_v2, %v836_v62  ;;  %v348_v2 = vld [vmem:[%s2037_s16 + $0x610] sm:$0xff] }
 0x187   : > { %v860_v6 = vmul.f32 %v348_v2, %v348_v2 }
 0x188   : > { %v1349_v8 = vadd.f32 %v1348_v5, %v837_v1  ;;  %v349_v5 = vld [vmem:[%s2037_s16 + $0x618] sm:$0xff] }
 0x189   : > { %v861_v9 = vmul.f32 %v349_v5, %v349_v5 }
 0x18a   : > { %v1350_v11 = vadd.f32 %v1349_v8, %v838_v4  ;;  %v350_v8 = vld [vmem:[%s2037_s16 + $0x620] sm:$0xff] }
 0x18b   : > { %v862_v12 = vmul.f32 %v350_v8, %v350_v8 }
 0x18c   : > { %v1351_v14 = vadd.f32 %v1350_v11, %v839_v7  ;;  %v351_v11 = vld [vmem:[%s2037_s16 + $0x628] sm:$0xff] }
 0x18d   : > { %v863_v15 = vmul.f32 %v351_v11, %v351_v11 }
 0x18e   : > { %v1352_v17 = vadd.f32 %v1351_v14, %v840_v10  ;;  %v352_v14 = vld [vmem:[%s2037_s16 + $0x630] sm:$0xff] }
 0x18f   : > { %v864_v18 = vmul.f32 %v352_v14, %v352_v14 }
 0x190   : > { %v1353_v20 = vadd.f32 %v1352_v17, %v841_v13  ;;  %v353_v17 = vld [vmem:[%s2037_s16 + $0x638] sm:$0xff] }
 0x191   : > { %v865_v21 = vmul.f32 %v353_v17, %v353_v17 }
 0x192   : > { %v1354_v23 = vadd.f32 %v1353_v20, %v842_v16  ;;  %v354_v20 = vld [vmem:[%s2037_s16 + $0x640] sm:$0xff] }
 0x193   : > { %v866_v24 = vmul.f32 %v354_v20, %v354_v20 }
 0x194   : > { %v1355_v26 = vadd.f32 %v1354_v23, %v843_v19  ;;  %v355_v23 = vld [vmem:[%s2037_s16 + $0x648] sm:$0xff] }
 0x195   : > { %v867_v27 = vmul.f32 %v355_v23, %v355_v23 }
 0x196   : > { %v1356_v29 = vadd.f32 %v1355_v26, %v844_v22  ;;  %v356_v26 = vld [vmem:[%s2037_s16 + $0x650] sm:$0xff] }
 0x197   : > { %v868_v30 = vmul.f32 %v356_v26, %v356_v26 }
 0x198   : > { %v1357_v32 = vadd.f32 %v1356_v29, %v845_v25  ;;  %v357_v29 = vld [vmem:[%s2037_s16 + $0x658] sm:$0xff] }
 0x199   : > { %v869_v33 = vmul.f32 %v357_v29, %v357_v29 }
 0x19a   : > { %v1358_v35 = vadd.f32 %v1357_v32, %v846_v28  ;;  %v358_v32 = vld [vmem:[%s2037_s16 + $0x660] sm:$0xff] }
 0x19b   : > { %v870_v36 = vmul.f32 %v358_v32, %v358_v32 }
 0x19c   : > { %v1359_v38 = vadd.f32 %v1358_v35, %v847_v31  ;;  %v359_v35 = vld [vmem:[%s2037_s16 + $0x668] sm:$0xff] }
 0x19d   : > { %v871_v39 = vmul.f32 %v359_v35, %v359_v35 }
 0x19e   : > { %v1360_v41 = vadd.f32 %v1359_v38, %v848_v34  ;;  %v360_v38 = vld [vmem:[%s2037_s16 + $0x670] sm:$0xff] }
 0x19f   : > { %v872_v42 = vmul.f32 %v360_v38, %v360_v38 }
 0x1a0   : > { %v1361_v44 = vadd.f32 %v1360_v41, %v849_v37  ;;  %v361_v41 = vld [vmem:[%s2037_s16 + $0x678] sm:$0xff] }
 0x1a1   : > { %v873_v45 = vmul.f32 %v361_v41, %v361_v41 }
 0x1a2   : > { %v1362_v47 = vadd.f32 %v1361_v44, %v850_v40  ;;  %v362_v44 = vld [vmem:[%s2037_s16 + $0x680] sm:$0xff] }
 0x1a3   : > { %v874_v48 = vmul.f32 %v362_v44, %v362_v44 }
 0x1a4   : > { %v1363_v50 = vadd.f32 %v1362_v47, %v851_v43  ;;  %v363_v47 = vld [vmem:[%s2037_s16 + $0x688] sm:$0xff] }
 0x1a5   : > { %v875_v51 = vmul.f32 %v363_v47, %v363_v47 }
 0x1a6   : > { %v1364_v53 = vadd.f32 %v1363_v50, %v852_v46  ;;  %v364_v50 = vld [vmem:[%s2037_s16 + $0x690] sm:$0xff] }
 0x1a7   : > { %v876_v54 = vmul.f32 %v364_v50, %v364_v50 }
 0x1a8   : > { %v1365_v56 = vadd.f32 %v1364_v53, %v853_v49  ;;  %v365_v53 = vld [vmem:[%s2037_s16 + $0x698] sm:$0xff] }
 0x1a9   : > { %v877_v57 = vmul.f32 %v365_v53, %v365_v53 }
 0x1aa   : > { %v1366_v59 = vadd.f32 %v1365_v56, %v854_v52  ;;  %v366_v56 = vld [vmem:[%s2037_s16 + $0x6a0] sm:$0xff] }
 0x1ab   : > { %v878_v60 = vmul.f32 %v366_v56, %v366_v56 }
 0x1ac   : > { %v1367_v62 = vadd.f32 %v1366_v59, %v855_v55  ;;  %v367_v59 = vld [vmem:[%s2037_s16 + $0x6a8] sm:$0xff] }
 0x1ad   : > { %v879_v63 = vmul.f32 %v367_v59, %v367_v59 }
 0x1ae   : > { %v1368_v1 = vadd.f32 %v1367_v62, %v856_v58  ;;  %v368_v62 = vld [vmem:[%s2037_s16 + $0x6b0] sm:$0xff] }
 0x1af   : > { %v880_v2 = vmul.f32 %v368_v62, %v368_v62 }
 0x1b0   : > { %v1369_v4 = vadd.f32 %v1368_v1, %v857_v61  ;;  %v369_v1 = vld [vmem:[%s2037_s16 + $0x6b8] sm:$0xff] }
 0x1b1   : > { %v881_v5 = vmul.f32 %v369_v1, %v369_v1 }
 0x1b2   : > { %v1370_v7 = vadd.f32 %v1369_v4, %v858_v0  ;;  %v370_v4 = vld [vmem:[%s2037_s16 + $0x6c0] sm:$0xff] }
 0x1b3   : > { %v882_v8 = vmul.f32 %v370_v4, %v370_v4 }
 0x1b4   : > { %v1371_v10 = vadd.f32 %v1370_v7, %v859_v3  ;;  %v371_v7 = vld [vmem:[%s2037_s16 + $0x6c8] sm:$0xff] }
 0x1b5   : > { %v883_v11 = vmul.f32 %v371_v7, %v371_v7 }
 0x1b6   : > { %v1372_v13 = vadd.f32 %v1371_v10, %v860_v6  ;;  %v372_v10 = vld [vmem:[%s2037_s16 + $0x6d0] sm:$0xff] }
 0x1b7   : > { %v884_v14 = vmul.f32 %v372_v10, %v372_v10 }
 0x1b8   : > { %v1373_v16 = vadd.f32 %v1372_v13, %v861_v9  ;;  %v373_v13 = vld [vmem:[%s2037_s16 + $0x6d8] sm:$0xff] }
 0x1b9   : > { %v885_v17 = vmul.f32 %v373_v13, %v373_v13 }
 0x1ba   : > { %v1374_v19 = vadd.f32 %v1373_v16, %v862_v12  ;;  %v374_v16 = vld [vmem:[%s2037_s16 + $0x6e0] sm:$0xff] }
 0x1bb   : > { %v886_v20 = vmul.f32 %v374_v16, %v374_v16 }
 0x1bc   : > { %v1375_v22 = vadd.f32 %v1374_v19, %v863_v15  ;;  %v375_v19 = vld [vmem:[%s2037_s16 + $0x6e8] sm:$0xff] }
 0x1bd   : > { %v887_v23 = vmul.f32 %v375_v19, %v375_v19 }
 0x1be   : > { %v1376_v25 = vadd.f32 %v1375_v22, %v864_v18  ;;  %v376_v22 = vld [vmem:[%s2037_s16 + $0x6f0] sm:$0xff] }
 0x1bf   : > { %v888_v26 = vmul.f32 %v376_v22, %v376_v22 }
 0x1c0   : > { %v1377_v28 = vadd.f32 %v1376_v25, %v865_v21  ;;  %v377_v25 = vld [vmem:[%s2037_s16 + $0x6f8] sm:$0xff] }
 0x1c1   : > { %v889_v29 = vmul.f32 %v377_v25, %v377_v25 }
 0x1c2   : > { %v1378_v31 = vadd.f32 %v1377_v28, %v866_v24  ;;  %v378_v28 = vld [vmem:[%s2037_s16 + $0x700] sm:$0xff] }
 0x1c3   : > { %v890_v32 = vmul.f32 %v378_v28, %v378_v28 }
 0x1c4   : > { %v1379_v34 = vadd.f32 %v1378_v31, %v867_v27  ;;  %v379_v31 = vld [vmem:[%s2037_s16 + $0x708] sm:$0xff] }
 0x1c5   : > { %v891_v35 = vmul.f32 %v379_v31, %v379_v31 }
 0x1c6   : > { %v1380_v37 = vadd.f32 %v1379_v34, %v868_v30  ;;  %v380_v34 = vld [vmem:[%s2037_s16 + $0x710] sm:$0xff] }
 0x1c7   : > { %v892_v38 = vmul.f32 %v380_v34, %v380_v34 }
 0x1c8   : > { %v1381_v40 = vadd.f32 %v1380_v37, %v869_v33  ;;  %v381_v37 = vld [vmem:[%s2037_s16 + $0x718] sm:$0xff] }
 0x1c9   : > { %v893_v41 = vmul.f32 %v381_v37, %v381_v37 }
 0x1ca   : > { %v1382_v43 = vadd.f32 %v1381_v40, %v870_v36  ;;  %v382_v40 = vld [vmem:[%s2037_s16 + $0x720] sm:$0xff] }
 0x1cb   : > { %v894_v44 = vmul.f32 %v382_v40, %v382_v40 }
 0x1cc   : > { %v1383_v46 = vadd.f32 %v1382_v43, %v871_v39  ;;  %v383_v43 = vld [vmem:[%s2037_s16 + $0x728] sm:$0xff] }
 0x1cd   : > { %v895_v47 = vmul.f32 %v383_v43, %v383_v43 }
 0x1ce   : > { %v1384_v49 = vadd.f32 %v1383_v46, %v872_v42  ;;  %v384_v46 = vld [vmem:[%s2037_s16 + $0x730] sm:$0xff] }
 0x1cf   : > { %v896_v50 = vmul.f32 %v384_v46, %v384_v46 }
 0x1d0   : > { %v1385_v52 = vadd.f32 %v1384_v49, %v873_v45  ;;  %v385_v49 = vld [vmem:[%s2037_s16 + $0x738] sm:$0xff] }
 0x1d1   : > { %v897_v53 = vmul.f32 %v385_v49, %v385_v49 }
 0x1d2   : > { %v1386_v55 = vadd.f32 %v1385_v52, %v874_v48  ;;  %v386_v52 = vld [vmem:[%s2037_s16 + $0x740] sm:$0xff] }
 0x1d3   : > { %v898_v56 = vmul.f32 %v386_v52, %v386_v52 }
 0x1d4   : > { %v1387_v58 = vadd.f32 %v1386_v55, %v875_v51  ;;  %v387_v55 = vld [vmem:[%s2037_s16 + $0x748] sm:$0xff] }
 0x1d5   : > { %v899_v59 = vmul.f32 %v387_v55, %v387_v55 }
 0x1d6   : > { %v1388_v61 = vadd.f32 %v1387_v58, %v876_v54  ;;  %v388_v58 = vld [vmem:[%s2037_s16 + $0x750] sm:$0xff] }
 0x1d7   : > { %v900_v62 = vmul.f32 %v388_v58, %v388_v58 }
 0x1d8   : > { %v1389_v0 = vadd.f32 %v1388_v61, %v877_v57  ;;  %v389_v61 = vld [vmem:[%s2037_s16 + $0x758] sm:$0xff] }
 0x1d9   : > { %v901_v1 = vmul.f32 %v389_v61, %v389_v61 }
 0x1da   : > { %v1390_v3 = vadd.f32 %v1389_v0, %v878_v60  ;;  %v390_v0 = vld [vmem:[%s2037_s16 + $0x760] sm:$0xff] }
 0x1db   : > { %v902_v4 = vmul.f32 %v390_v0, %v390_v0 }
 0x1dc   : > { %v1391_v6 = vadd.f32 %v1390_v3, %v879_v63  ;;  %v391_v3 = vld [vmem:[%s2037_s16 + $0x768] sm:$0xff] }
 0x1dd   : > { %v903_v7 = vmul.f32 %v391_v3, %v391_v3 }
 0x1de   : > { %v1392_v9 = vadd.f32 %v1391_v6, %v880_v2  ;;  %v392_v6 = vld [vmem:[%s2037_s16 + $0x770] sm:$0xff] }
 0x1df   : > { %v904_v10 = vmul.f32 %v392_v6, %v392_v6 }
 0x1e0   : > { %v1393_v12 = vadd.f32 %v1392_v9, %v881_v5  ;;  %v393_v9 = vld [vmem:[%s2037_s16 + $0x778] sm:$0xff] }
 0x1e1   : > { %v905_v13 = vmul.f32 %v393_v9, %v393_v9 }
 0x1e2   : > { %v1394_v15 = vadd.f32 %v1393_v12, %v882_v8  ;;  %v394_v12 = vld [vmem:[%s2037_s16 + $0x780] sm:$0xff] }
 0x1e3   : > { %v906_v16 = vmul.f32 %v394_v12, %v394_v12 }
 0x1e4   : > { %v1395_v18 = vadd.f32 %v1394_v15, %v883_v11  ;;  %v395_v15 = vld [vmem:[%s2037_s16 + $0x788] sm:$0xff] }
 0x1e5   : > { %v907_v19 = vmul.f32 %v395_v15, %v395_v15 }
 0x1e6   : > { %v1396_v21 = vadd.f32 %v1395_v18, %v884_v14  ;;  %v396_v18 = vld [vmem:[%s2037_s16 + $0x790] sm:$0xff] }
 0x1e7   : > { %v908_v22 = vmul.f32 %v396_v18, %v396_v18 }
 0x1e8   : > { %v1397_v24 = vadd.f32 %v1396_v21, %v885_v17  ;;  %v397_v21 = vld [vmem:[%s2037_s16 + $0x798] sm:$0xff] }
 0x1e9   : > { %v909_v25 = vmul.f32 %v397_v21, %v397_v21 }
 0x1ea   : > { %v1398_v27 = vadd.f32 %v1397_v24, %v886_v20  ;;  %v398_v24 = vld [vmem:[%s2037_s16 + $0x7a0] sm:$0xff] }
 0x1eb   : > { %v910_v28 = vmul.f32 %v398_v24, %v398_v24 }
 0x1ec   : > { %v1399_v30 = vadd.f32 %v1398_v27, %v887_v23  ;;  %v399_v27 = vld [vmem:[%s2037_s16 + $0x7a8] sm:$0xff] }
 0x1ed   : > { %v911_v31 = vmul.f32 %v399_v27, %v399_v27 }
 0x1ee   : > { %v1400_v33 = vadd.f32 %v1399_v30, %v888_v26  ;;  %v400_v30 = vld [vmem:[%s2037_s16 + $0x7b0] sm:$0xff] }
 0x1ef   : > { %v912_v34 = vmul.f32 %v400_v30, %v400_v30 }
 0x1f0   : > { %v1401_v36 = vadd.f32 %v1400_v33, %v889_v29  ;;  %v401_v33 = vld [vmem:[%s2037_s16 + $0x7b8] sm:$0xff] }
 0x1f1   : > { %v913_v37 = vmul.f32 %v401_v33, %v401_v33 }
 0x1f2   : > { %v1402_v39 = vadd.f32 %v1401_v36, %v890_v32  ;;  %v402_v36 = vld [vmem:[%s2037_s16 + $0x7c0] sm:$0xff] }
 0x1f3   : > { %v914_v40 = vmul.f32 %v402_v36, %v402_v36 }
 0x1f4   : > { %v1403_v42 = vadd.f32 %v1402_v39, %v891_v35  ;;  %v403_v39 = vld [vmem:[%s2037_s16 + $0x7c8] sm:$0xff] }
 0x1f5   : > { %v915_v43 = vmul.f32 %v403_v39, %v403_v39 }
 0x1f6   : > { %v1404_v45 = vadd.f32 %v1403_v42, %v892_v38  ;;  %v404_v42 = vld [vmem:[%s2037_s16 + $0x7d0] sm:$0xff] }
 0x1f7   : > { %v916_v46 = vmul.f32 %v404_v42, %v404_v42 }
 0x1f8   : > { %v1405_v48 = vadd.f32 %v1404_v45, %v893_v41  ;;  %v405_v45 = vld [vmem:[%s2037_s16 + $0x7d8] sm:$0xff] }
 0x1f9   : > { %v917_v49 = vmul.f32 %v405_v45, %v405_v45 }
 0x1fa   : > { %v1406_v51 = vadd.f32 %v1405_v48, %v894_v44  ;;  %v406_v48 = vld [vmem:[%s2037_s16 + $0x7e0] sm:$0xff] }
 0x1fb   : > { %v918_v52 = vmul.f32 %v406_v48, %v406_v48 }
 0x1fc   : > { %v1407_v54 = vadd.f32 %v1406_v51, %v895_v47  ;;  %v407_v51 = vld [vmem:[%s2037_s16 + $0x7e8] sm:$0xff] }
 0x1fd   : > { %v919_v55 = vmul.f32 %v407_v51, %v407_v51 }
 0x1fe   : > { %v1408_v57 = vadd.f32 %v1407_v54, %v896_v50  ;;  %v408_v54 = vld [vmem:[%s2037_s16 + $0x7f0] sm:$0xff] }
 0x1ff   : > { %v920_v58 = vmul.f32 %v408_v54, %v408_v54 }
 0x200   : > { %v1409_v60 = vadd.f32 %v1408_v57, %v897_v53  ;;  %v409_v57 = vld [vmem:[%s2037_s16 + $0x7f8] sm:$0xff] }
 0x201   : > { %v921_v61 = vmul.f32 %v409_v57, %v409_v57 }
 0x202   : > { %v1410_v63 = vadd.f32 %v1409_v60, %v898_v56  ;;  %v410_v60 = vld [vmem:[%s2037_s16 + $0x800] sm:$0xff] }
 0x203   : > { %v922_v0 = vmul.f32 %v410_v60, %v410_v60 }
 0x204   : > { %v1411_v2 = vadd.f32 %v1410_v63, %v899_v59  ;;  %v411_v63 = vld [vmem:[%s2037_s16 + $0x808] sm:$0xff] }
 0x205   : > { %v923_v3 = vmul.f32 %v411_v63, %v411_v63 }
 0x206   : > { %v1412_v5 = vadd.f32 %v1411_v2, %v900_v62  ;;  %v412_v2 = vld [vmem:[%s2037_s16 + $0x810] sm:$0xff] }
 0x207   : > { %v924_v6 = vmul.f32 %v412_v2, %v412_v2 }
 0x208   : > { %v1413_v8 = vadd.f32 %v1412_v5, %v901_v1  ;;  %v413_v5 = vld [vmem:[%s2037_s16 + $0x818] sm:$0xff] }
 0x209   : > { %v925_v9 = vmul.f32 %v413_v5, %v413_v5 }
 0x20a   : > { %v1414_v11 = vadd.f32 %v1413_v8, %v902_v4  ;;  %v414_v8 = vld [vmem:[%s2037_s16 + $0x820] sm:$0xff] }
 0x20b   : > { %v926_v12 = vmul.f32 %v414_v8, %v414_v8 }
 0x20c   : > { %v1415_v14 = vadd.f32 %v1414_v11, %v903_v7  ;;  %v415_v11 = vld [vmem:[%s2037_s16 + $0x828] sm:$0xff] }
 0x20d   : > { %v927_v15 = vmul.f32 %v415_v11, %v415_v11 }
 0x20e   : > { %v1416_v17 = vadd.f32 %v1415_v14, %v904_v10  ;;  %v416_v14 = vld [vmem:[%s2037_s16 + $0x830] sm:$0xff] }
 0x20f   : > { %v928_v18 = vmul.f32 %v416_v14, %v416_v14 }
 0x210   : > { %v1417_v20 = vadd.f32 %v1416_v17, %v905_v13  ;;  %v417_v17 = vld [vmem:[%s2037_s16 + $0x838] sm:$0xff] }
 0x211   : > { %v929_v21 = vmul.f32 %v417_v17, %v417_v17 }
 0x212   : > { %v1418_v23 = vadd.f32 %v1417_v20, %v906_v16  ;;  %v418_v20 = vld [vmem:[%s2037_s16 + $0x840] sm:$0xff] }
 0x213   : > { %v930_v24 = vmul.f32 %v418_v20, %v418_v20 }
 0x214   : > { %v1419_v26 = vadd.f32 %v1418_v23, %v907_v19  ;;  %v419_v23 = vld [vmem:[%s2037_s16 + $0x848] sm:$0xff] }
 0x215   : > { %v931_v27 = vmul.f32 %v419_v23, %v419_v23 }
 0x216   : > { %v1420_v29 = vadd.f32 %v1419_v26, %v908_v22  ;;  %v420_v26 = vld [vmem:[%s2037_s16 + $0x850] sm:$0xff] }
 0x217   : > { %v932_v30 = vmul.f32 %v420_v26, %v420_v26 }
 0x218   : > { %v1421_v32 = vadd.f32 %v1420_v29, %v909_v25  ;;  %v421_v29 = vld [vmem:[%s2037_s16 + $0x858] sm:$0xff] }
 0x219   : > { %v933_v33 = vmul.f32 %v421_v29, %v421_v29 }
 0x21a   : > { %v1422_v35 = vadd.f32 %v1421_v32, %v910_v28  ;;  %v422_v32 = vld [vmem:[%s2037_s16 + $0x860] sm:$0xff] }
 0x21b   : > { %v934_v36 = vmul.f32 %v422_v32, %v422_v32 }
 0x21c   : > { %v1423_v38 = vadd.f32 %v1422_v35, %v911_v31  ;;  %v423_v35 = vld [vmem:[%s2037_s16 + $0x868] sm:$0xff] }
 0x21d   : > { %v935_v39 = vmul.f32 %v423_v35, %v423_v35 }
 0x21e   : > { %v1424_v41 = vadd.f32 %v1423_v38, %v912_v34  ;;  %v424_v38 = vld [vmem:[%s2037_s16 + $0x870] sm:$0xff] }
 0x21f   : > { %v936_v42 = vmul.f32 %v424_v38, %v424_v38 }
 0x220   : > { %v1425_v44 = vadd.f32 %v1424_v41, %v913_v37  ;;  %v425_v41 = vld [vmem:[%s2037_s16 + $0x878] sm:$0xff] }
 0x221   : > { %v937_v45 = vmul.f32 %v425_v41, %v425_v41 }
 0x222   : > { %v1426_v47 = vadd.f32 %v1425_v44, %v914_v40  ;;  %v426_v44 = vld [vmem:[%s2037_s16 + $0x880] sm:$0xff] }
 0x223   : > { %v938_v48 = vmul.f32 %v426_v44, %v426_v44 }
 0x224   : > { %v1427_v50 = vadd.f32 %v1426_v47, %v915_v43  ;;  %v427_v47 = vld [vmem:[%s2037_s16 + $0x888] sm:$0xff] }
 0x225   : > { %v939_v51 = vmul.f32 %v427_v47, %v427_v47 }
 0x226   : > { %v1428_v53 = vadd.f32 %v1427_v50, %v916_v46  ;;  %v428_v50 = vld [vmem:[%s2037_s16 + $0x890] sm:$0xff] }
 0x227   : > { %v940_v54 = vmul.f32 %v428_v50, %v428_v50 }
 0x228   : > { %v1429_v56 = vadd.f32 %v1428_v53, %v917_v49  ;;  %v429_v53 = vld [vmem:[%s2037_s16 + $0x898] sm:$0xff] }
 0x229   : > { %v941_v57 = vmul.f32 %v429_v53, %v429_v53 }
 0x22a   : > { %v1430_v59 = vadd.f32 %v1429_v56, %v918_v52  ;;  %v430_v56 = vld [vmem:[%s2037_s16 + $0x8a0] sm:$0xff] }
 0x22b   : > { %v942_v60 = vmul.f32 %v430_v56, %v430_v56 }
 0x22c   : > { %v1431_v62 = vadd.f32 %v1430_v59, %v919_v55  ;;  %v431_v59 = vld [vmem:[%s2037_s16 + $0x8a8] sm:$0xff] }
 0x22d   : > { %v943_v63 = vmul.f32 %v431_v59, %v431_v59 }
 0x22e   : > { %v1432_v1 = vadd.f32 %v1431_v62, %v920_v58  ;;  %v432_v62 = vld [vmem:[%s2037_s16 + $0x8b0] sm:$0xff] }
 0x22f   : > { %v944_v2 = vmul.f32 %v432_v62, %v432_v62 }
 0x230   : > { %v1433_v4 = vadd.f32 %v1432_v1, %v921_v61  ;;  %v433_v1 = vld [vmem:[%s2037_s16 + $0x8b8] sm:$0xff] }
 0x231   : > { %v945_v5 = vmul.f32 %v433_v1, %v433_v1 }
 0x232   : > { %v1434_v7 = vadd.f32 %v1433_v4, %v922_v0  ;;  %v434_v4 = vld [vmem:[%s2037_s16 + $0x8c0] sm:$0xff] }
 0x233   : > { %v946_v8 = vmul.f32 %v434_v4, %v434_v4 }
 0x234   : > { %v1435_v10 = vadd.f32 %v1434_v7, %v923_v3  ;;  %v435_v7 = vld [vmem:[%s2037_s16 + $0x8c8] sm:$0xff] }
 0x235   : > { %v947_v11 = vmul.f32 %v435_v7, %v435_v7 }
 0x236   : > { %v1436_v13 = vadd.f32 %v1435_v10, %v924_v6  ;;  %v436_v10 = vld [vmem:[%s2037_s16 + $0x8d0] sm:$0xff] }
 0x237   : > { %v948_v14 = vmul.f32 %v436_v10, %v436_v10 }
 0x238   : > { %v1437_v16 = vadd.f32 %v1436_v13, %v925_v9  ;;  %v437_v13 = vld [vmem:[%s2037_s16 + $0x8d8] sm:$0xff] }
 0x239   : > { %v949_v17 = vmul.f32 %v437_v13, %v437_v13 }
 0x23a   : > { %v1438_v19 = vadd.f32 %v1437_v16, %v926_v12  ;;  %v438_v16 = vld [vmem:[%s2037_s16 + $0x8e0] sm:$0xff] }
 0x23b   : > { %v950_v20 = vmul.f32 %v438_v16, %v438_v16 }
 0x23c   : > { %v1439_v22 = vadd.f32 %v1438_v19, %v927_v15  ;;  %v439_v19 = vld [vmem:[%s2037_s16 + $0x8e8] sm:$0xff] }
 0x23d   : > { %v951_v23 = vmul.f32 %v439_v19, %v439_v19 }
 0x23e   : > { %v1440_v25 = vadd.f32 %v1439_v22, %v928_v18  ;;  %v440_v22 = vld [vmem:[%s2037_s16 + $0x8f0] sm:$0xff] }
 0x23f   : > { %v952_v26 = vmul.f32 %v440_v22, %v440_v22 }
 0x240   : > { %v1441_v28 = vadd.f32 %v1440_v25, %v929_v21  ;;  %v441_v25 = vld [vmem:[%s2037_s16 + $0x8f8] sm:$0xff] }
 0x241   : > { %v953_v29 = vmul.f32 %v441_v25, %v441_v25 }
 0x242   : > { %v1442_v31 = vadd.f32 %v1441_v28, %v930_v24  ;;  %v442_v28 = vld [vmem:[%s2037_s16 + $0x900] sm:$0xff] }
 0x243   : > { %v954_v32 = vmul.f32 %v442_v28, %v442_v28 }
 0x244   : > { %v1443_v34 = vadd.f32 %v1442_v31, %v931_v27  ;;  %v443_v31 = vld [vmem:[%s2037_s16 + $0x908] sm:$0xff] }
 0x245   : > { %v955_v35 = vmul.f32 %v443_v31, %v443_v31 }
 0x246   : > { %v1444_v37 = vadd.f32 %v1443_v34, %v932_v30  ;;  %v444_v34 = vld [vmem:[%s2037_s16 + $0x910] sm:$0xff] }
 0x247   : > { %v956_v38 = vmul.f32 %v444_v34, %v444_v34 }
 0x248   : > { %v1445_v40 = vadd.f32 %v1444_v37, %v933_v33  ;;  %v445_v37 = vld [vmem:[%s2037_s16 + $0x918] sm:$0xff] }
 0x249   : > { %v957_v41 = vmul.f32 %v445_v37, %v445_v37 }
 0x24a   : > { %v1446_v43 = vadd.f32 %v1445_v40, %v934_v36  ;;  %v446_v40 = vld [vmem:[%s2037_s16 + $0x920] sm:$0xff] }
 0x24b   : > { %v958_v44 = vmul.f32 %v446_v40, %v446_v40 }
 0x24c   : > { %v1447_v46 = vadd.f32 %v1446_v43, %v935_v39  ;;  %v447_v43 = vld [vmem:[%s2037_s16 + $0x928] sm:$0xff] }
 0x24d   : > { %v959_v47 = vmul.f32 %v447_v43, %v447_v43 }
 0x24e   : > { %v1448_v49 = vadd.f32 %v1447_v46, %v936_v42  ;;  %v448_v46 = vld [vmem:[%s2037_s16 + $0x930] sm:$0xff] }
 0x24f   : > { %v960_v50 = vmul.f32 %v448_v46, %v448_v46 }
 0x250   : > { %v1449_v52 = vadd.f32 %v1448_v49, %v937_v45  ;;  %v449_v49 = vld [vmem:[%s2037_s16 + $0x938] sm:$0xff] }
 0x251   : > { %v961_v53 = vmul.f32 %v449_v49, %v449_v49 }
 0x252   : > { %v1450_v55 = vadd.f32 %v1449_v52, %v938_v48  ;;  %v450_v52 = vld [vmem:[%s2037_s16 + $0x940] sm:$0xff] }
 0x253   : > { %v962_v56 = vmul.f32 %v450_v52, %v450_v52 }
 0x254   : > { %v1451_v58 = vadd.f32 %v1450_v55, %v939_v51  ;;  %v451_v55 = vld [vmem:[%s2037_s16 + $0x948] sm:$0xff] }
 0x255   : > { %v963_v59 = vmul.f32 %v451_v55, %v451_v55 }
 0x256   : > { %v1452_v61 = vadd.f32 %v1451_v58, %v940_v54  ;;  %v452_v58 = vld [vmem:[%s2037_s16 + $0x950] sm:$0xff] }
 0x257   : > { %v964_v62 = vmul.f32 %v452_v58, %v452_v58 }
 0x258   : > { %v1453_v0 = vadd.f32 %v1452_v61, %v941_v57  ;;  %v453_v61 = vld [vmem:[%s2037_s16 + $0x958] sm:$0xff] }
 0x259   : > { %v965_v1 = vmul.f32 %v453_v61, %v453_v61 }
 0x25a   : > { %v1454_v3 = vadd.f32 %v1453_v0, %v942_v60  ;;  %v454_v0 = vld [vmem:[%s2037_s16 + $0x960] sm:$0xff] }
 0x25b   : > { %v966_v4 = vmul.f32 %v454_v0, %v454_v0 }
 0x25c   : > { %v1455_v6 = vadd.f32 %v1454_v3, %v943_v63  ;;  %v455_v3 = vld [vmem:[%s2037_s16 + $0x968] sm:$0xff] }
 0x25d   : > { %v967_v7 = vmul.f32 %v455_v3, %v455_v3 }
 0x25e   : > { %v1456_v9 = vadd.f32 %v1455_v6, %v944_v2  ;;  %v456_v6 = vld [vmem:[%s2037_s16 + $0x970] sm:$0xff] }
 0x25f   : > { %v968_v10 = vmul.f32 %v456_v6, %v456_v6 }
 0x260   : > { %v1457_v12 = vadd.f32 %v1456_v9, %v945_v5  ;;  %v457_v9 = vld [vmem:[%s2037_s16 + $0x978] sm:$0xff] }
 0x261   : > { %v969_v13 = vmul.f32 %v457_v9, %v457_v9 }
 0x262   : > { %v1458_v15 = vadd.f32 %v1457_v12, %v946_v8  ;;  %v458_v12 = vld [vmem:[%s2037_s16 + $0x980] sm:$0xff] }
 0x263   : > { %v970_v16 = vmul.f32 %v458_v12, %v458_v12 }
 0x264   : > { %v1459_v18 = vadd.f32 %v1458_v15, %v947_v11  ;;  %v459_v15 = vld [vmem:[%s2037_s16 + $0x988] sm:$0xff] }
 0x265   : > { %v971_v19 = vmul.f32 %v459_v15, %v459_v15 }
 0x266   : > { %v1460_v21 = vadd.f32 %v1459_v18, %v948_v14  ;;  %v460_v18 = vld [vmem:[%s2037_s16 + $0x990] sm:$0xff] }
 0x267   : > { %v972_v22 = vmul.f32 %v460_v18, %v460_v18 }
 0x268   : > { %v1461_v24 = vadd.f32 %v1460_v21, %v949_v17  ;;  %v461_v21 = vld [vmem:[%s2037_s16 + $0x998] sm:$0xff] }
 0x269   : > { %v973_v25 = vmul.f32 %v461_v21, %v461_v21 }
 0x26a   : > { %v1462_v27 = vadd.f32 %v1461_v24, %v950_v20  ;;  %v462_v24 = vld [vmem:[%s2037_s16 + $0x9a0] sm:$0xff] }
 0x26b   : > { %v974_v28 = vmul.f32 %v462_v24, %v462_v24 }
 0x26c   : > { %v1463_v30 = vadd.f32 %v1462_v27, %v951_v23  ;;  %v463_v27 = vld [vmem:[%s2037_s16 + $0x9a8] sm:$0xff] }
 0x26d   : > { %v975_v31 = vmul.f32 %v463_v27, %v463_v27 }
 0x26e   : > { %v1464_v33 = vadd.f32 %v1463_v30, %v952_v26  ;;  %v464_v30 = vld [vmem:[%s2037_s16 + $0x9b0] sm:$0xff] }
 0x26f   : > { %v976_v34 = vmul.f32 %v464_v30, %v464_v30 }
 0x270   : > { %v1465_v36 = vadd.f32 %v1464_v33, %v953_v29  ;;  %v465_v33 = vld [vmem:[%s2037_s16 + $0x9b8] sm:$0xff] }
 0x271   : > { %v977_v37 = vmul.f32 %v465_v33, %v465_v33 }
 0x272   : > { %v1466_v39 = vadd.f32 %v1465_v36, %v954_v32  ;;  %v466_v36 = vld [vmem:[%s2037_s16 + $0x9c0] sm:$0xff] }
 0x273   : > { %v978_v40 = vmul.f32 %v466_v36, %v466_v36 }
 0x274   : > { %v1467_v42 = vadd.f32 %v1466_v39, %v955_v35  ;;  %v467_v39 = vld [vmem:[%s2037_s16 + $0x9c8] sm:$0xff] }
 0x275   : > { %v979_v43 = vmul.f32 %v467_v39, %v467_v39 }
 0x276   : > { %v1468_v45 = vadd.f32 %v1467_v42, %v956_v38  ;;  %v468_v42 = vld [vmem:[%s2037_s16 + $0x9d0] sm:$0xff] }
 0x277   : > { %v980_v46 = vmul.f32 %v468_v42, %v468_v42 }
 0x278   : > { %v1469_v48 = vadd.f32 %v1468_v45, %v957_v41  ;;  %v469_v45 = vld [vmem:[%s2037_s16 + $0x9d8] sm:$0xff] }
 0x279   : > { %v981_v49 = vmul.f32 %v469_v45, %v469_v45 }
 0x27a   : > { %v1470_v51 = vadd.f32 %v1469_v48, %v958_v44  ;;  %v470_v48 = vld [vmem:[%s2037_s16 + $0x9e0] sm:$0xff] }
 0x27b   : > { %v982_v52 = vmul.f32 %v470_v48, %v470_v48 }
 0x27c   : > { %v1471_v54 = vadd.f32 %v1470_v51, %v959_v47  ;;  %v471_v51 = vld [vmem:[%s2037_s16 + $0x9e8] sm:$0xff] }
 0x27d   : > { %v983_v55 = vmul.f32 %v471_v51, %v471_v51 }
 0x27e   : > { %v1472_v57 = vadd.f32 %v1471_v54, %v960_v50  ;;  %v472_v54 = vld [vmem:[%s2037_s16 + $0x9f0] sm:$0xff] }
 0x27f   : > { %v984_v58 = vmul.f32 %v472_v54, %v472_v54 }
 0x280   : > { %v1473_v60 = vadd.f32 %v1472_v57, %v961_v53  ;;  %v473_v57 = vld [vmem:[%s2037_s16 + $0x9f8] sm:$0xff] }
 0x281   : > { %v985_v61 = vmul.f32 %v473_v57, %v473_v57 }
 0x282   : > { %v1474_v63 = vadd.f32 %v1473_v60, %v962_v56  ;;  %v474_v60 = vld [vmem:[%s2037_s16 + $0xa00] sm:$0xff] }
 0x283   : > { %v986_v0 = vmul.f32 %v474_v60, %v474_v60 }
 0x284   : > { %v1475_v2 = vadd.f32 %v1474_v63, %v963_v59  ;;  %v475_v63 = vld [vmem:[%s2037_s16 + $0xa08] sm:$0xff] }
 0x285   : > { %v987_v3 = vmul.f32 %v475_v63, %v475_v63 }
 0x286   : > { %v1476_v5 = vadd.f32 %v1475_v2, %v964_v62  ;;  %v476_v2 = vld [vmem:[%s2037_s16 + $0xa10] sm:$0xff] }
 0x287   : > { %v988_v6 = vmul.f32 %v476_v2, %v476_v2 }
 0x288   : > { %v1477_v8 = vadd.f32 %v1476_v5, %v965_v1  ;;  %v477_v5 = vld [vmem:[%s2037_s16 + $0xa18] sm:$0xff] }
 0x289   : > { %v989_v9 = vmul.f32 %v477_v5, %v477_v5 }
 0x28a   : > { %v1478_v11 = vadd.f32 %v1477_v8, %v966_v4  ;;  %v478_v8 = vld [vmem:[%s2037_s16 + $0xa20] sm:$0xff] }
 0x28b   : > { %v990_v12 = vmul.f32 %v478_v8, %v478_v8 }
 0x28c   : > { %v1479_v14 = vadd.f32 %v1478_v11, %v967_v7  ;;  %v479_v11 = vld [vmem:[%s2037_s16 + $0xa28] sm:$0xff] }
 0x28d   : > { %v991_v15 = vmul.f32 %v479_v11, %v479_v11 }
 0x28e   : > { %v1480_v17 = vadd.f32 %v1479_v14, %v968_v10  ;;  %v480_v14 = vld [vmem:[%s2037_s16 + $0xa30] sm:$0xff] }
 0x28f   : > { %v992_v18 = vmul.f32 %v480_v14, %v480_v14 }
 0x290   : > { %v1481_v20 = vadd.f32 %v1480_v17, %v969_v13  ;;  %v481_v17 = vld [vmem:[%s2037_s16 + $0xa38] sm:$0xff] }
 0x291   : > { %v993_v21 = vmul.f32 %v481_v17, %v481_v17 }
 0x292   : > { %v1482_v23 = vadd.f32 %v1481_v20, %v970_v16  ;;  %v482_v20 = vld [vmem:[%s2037_s16 + $0xa40] sm:$0xff] }
 0x293   : > { %v994_v24 = vmul.f32 %v482_v20, %v482_v20 }
 0x294   : > { %v1483_v26 = vadd.f32 %v1482_v23, %v971_v19  ;;  %v483_v23 = vld [vmem:[%s2037_s16 + $0xa48] sm:$0xff] }
 0x295   : > { %v995_v27 = vmul.f32 %v483_v23, %v483_v23 }
 0x296   : > { %v1484_v29 = vadd.f32 %v1483_v26, %v972_v22  ;;  %v484_v26 = vld [vmem:[%s2037_s16 + $0xa50] sm:$0xff] }
 0x297   : > { %v996_v30 = vmul.f32 %v484_v26, %v484_v26 }
 0x298   : > { %v1485_v32 = vadd.f32 %v1484_v29, %v973_v25  ;;  %v485_v29 = vld [vmem:[%s2037_s16 + $0xa58] sm:$0xff] }
 0x299   : > { %v997_v33 = vmul.f32 %v485_v29, %v485_v29 }
 0x29a   : > { %v1486_v35 = vadd.f32 %v1485_v32, %v974_v28  ;;  %v486_v32 = vld [vmem:[%s2037_s16 + $0xa60] sm:$0xff] }
 0x29b   : > { %v998_v36 = vmul.f32 %v486_v32, %v486_v32 }
 0x29c   : > { %v1487_v38 = vadd.f32 %v1486_v35, %v975_v31  ;;  %v487_v35 = vld [vmem:[%s2037_s16 + $0xa68] sm:$0xff] }
 0x29d   : > { %v999_v39 = vmul.f32 %v487_v35, %v487_v35 }
 0x29e   : > { %v1488_v41 = vadd.f32 %v1487_v38, %v976_v34  ;;  %v488_v38 = vld [vmem:[%s2037_s16 + $0xa70] sm:$0xff] }
 0x29f   : > { %v1000_v42 = vmul.f32 %v488_v38, %v488_v38 }
 0x2a0   : > { %v1489_v44 = vadd.f32 %v1488_v41, %v977_v37  ;;  %v489_v41 = vld [vmem:[%s2037_s16 + $0xa78] sm:$0xff] }
 0x2a1   : > { %v1001_v45 = vmul.f32 %v489_v41, %v489_v41 }
 0x2a2   : > { %v1490_v47 = vadd.f32 %v1489_v44, %v978_v40  ;;  %v490_v44 = vld [vmem:[%s2037_s16 + $0xa80] sm:$0xff] }
 0x2a3   : > { %v1002_v48 = vmul.f32 %v490_v44, %v490_v44 }
 0x2a4   : > { %v1491_v50 = vadd.f32 %v1490_v47, %v979_v43  ;;  %v491_v47 = vld [vmem:[%s2037_s16 + $0xa88] sm:$0xff] }
 0x2a5   : > { %v1003_v51 = vmul.f32 %v491_v47, %v491_v47 }
 0x2a6   : > { %v1492_v53 = vadd.f32 %v1491_v50, %v980_v46  ;;  %v492_v50 = vld [vmem:[%s2037_s16 + $0xa90] sm:$0xff] }
 0x2a7   : > { %v1004_v54 = vmul.f32 %v492_v50, %v492_v50 }
 0x2a8   : > { %v1493_v56 = vadd.f32 %v1492_v53, %v981_v49  ;;  %v493_v53 = vld [vmem:[%s2037_s16 + $0xa98] sm:$0xff] }
 0x2a9   : > { %v1005_v57 = vmul.f32 %v493_v53, %v493_v53 }
 0x2aa   : > { %v1494_v59 = vadd.f32 %v1493_v56, %v982_v52  ;;  %v494_v56 = vld [vmem:[%s2037_s16 + $0xaa0] sm:$0xff] }
 0x2ab   : > { %v1006_v60 = vmul.f32 %v494_v56, %v494_v56 }
 0x2ac   : > { %v1495_v62 = vadd.f32 %v1494_v59, %v983_v55  ;;  %v495_v59 = vld [vmem:[%s2037_s16 + $0xaa8] sm:$0xff] }
 0x2ad   : > { %v1007_v63 = vmul.f32 %v495_v59, %v495_v59 }
 0x2ae   : > { %v1496_v1 = vadd.f32 %v1495_v62, %v984_v58  ;;  %v496_v62 = vld [vmem:[%s2037_s16 + $0xab0] sm:$0xff] }
 0x2af   : > { %v1008_v2 = vmul.f32 %v496_v62, %v496_v62 }
 0x2b0   : > { %v1497_v4 = vadd.f32 %v1496_v1, %v985_v61  ;;  %v497_v1 = vld [vmem:[%s2037_s16 + $0xab8] sm:$0xff] }
 0x2b1   : > { %v1009_v5 = vmul.f32 %v497_v1, %v497_v1 }
 0x2b2   : > { %v1498_v7 = vadd.f32 %v1497_v4, %v986_v0  ;;  %v498_v4 = vld [vmem:[%s2037_s16 + $0xac0] sm:$0xff] }
 0x2b3   : > { %v1010_v8 = vmul.f32 %v498_v4, %v498_v4 }
 0x2b4   : > { %v1499_v10 = vadd.f32 %v1498_v7, %v987_v3  ;;  %v499_v7 = vld [vmem:[%s2037_s16 + $0xac8] sm:$0xff] }
 0x2b5   : > { %v1011_v11 = vmul.f32 %v499_v7, %v499_v7 }
 0x2b6   : > { %v1500_v13 = vadd.f32 %v1499_v10, %v988_v6  ;;  %v500_v10 = vld [vmem:[%s2037_s16 + $0xad0] sm:$0xff] }
 0x2b7   : > { %v1012_v14 = vmul.f32 %v500_v10, %v500_v10 }
 0x2b8   : > { %v1501_v16 = vadd.f32 %v1500_v13, %v989_v9  ;;  %v501_v13 = vld [vmem:[%s2037_s16 + $0xad8] sm:$0xff] }
 0x2b9   : > { %v1013_v17 = vmul.f32 %v501_v13, %v501_v13 }
 0x2ba   : > { %v1502_v19 = vadd.f32 %v1501_v16, %v990_v12  ;;  %v502_v16 = vld [vmem:[%s2037_s16 + $0xae0] sm:$0xff] }
 0x2bb   : > { %v1014_v20 = vmul.f32 %v502_v16, %v502_v16 }
 0x2bc   : > { %v1503_v22 = vadd.f32 %v1502_v19, %v991_v15  ;;  %v503_v19 = vld [vmem:[%s2037_s16 + $0xae8] sm:$0xff] }
 0x2bd   : > { %v1015_v23 = vmul.f32 %v503_v19, %v503_v19 }
 0x2be   : > { %v1504_v25 = vadd.f32 %v1503_v22, %v992_v18  ;;  %v504_v22 = vld [vmem:[%s2037_s16 + $0xaf0] sm:$0xff] }
 0x2bf   : > { %v1016_v26 = vmul.f32 %v504_v22, %v504_v22 }
 0x2c0   : > { %v1505_v28 = vadd.f32 %v1504_v25, %v993_v21  ;;  %v505_v25 = vld [vmem:[%s2037_s16 + $0xaf8] sm:$0xff] }
 0x2c1   : > { %v1017_v29 = vmul.f32 %v505_v25, %v505_v25 }
 0x2c2   : > { %v1506_v31 = vadd.f32 %v1505_v28, %v994_v24  ;;  %v506_v28 = vld [vmem:[%s2037_s16 + $0xb00] sm:$0xff] }
 0x2c3   : > { %v1018_v32 = vmul.f32 %v506_v28, %v506_v28 }
 0x2c4   : > { %v1507_v34 = vadd.f32 %v1506_v31, %v995_v27  ;;  %v507_v31 = vld [vmem:[%s2037_s16 + $0xb08] sm:$0xff] }
 0x2c5   : > { %v1019_v35 = vmul.f32 %v507_v31, %v507_v31 }
 0x2c6   : > { %v1508_v37 = vadd.f32 %v1507_v34, %v996_v30  ;;  %v508_v34 = vld [vmem:[%s2037_s16 + $0xb10] sm:$0xff] }
 0x2c7   : > { %v1020_v38 = vmul.f32 %v508_v34, %v508_v34 }
 0x2c8   : > { %v1509_v40 = vadd.f32 %v1508_v37, %v997_v33  ;;  %v509_v37 = vld [vmem:[%s2037_s16 + $0xb18] sm:$0xff] }
 0x2c9   : > { %v1021_v41 = vmul.f32 %v509_v37, %v509_v37 }
 0x2ca   : > { %v1510_v43 = vadd.f32 %v1509_v40, %v998_v36  ;;  %v510_v40 = vld [vmem:[%s2037_s16 + $0xb20] sm:$0xff] }
 0x2cb   : > { %v1022_v44 = vmul.f32 %v510_v40, %v510_v40 }
 0x2cc   : > { %v1511_v46 = vadd.f32 %v1510_v43, %v999_v39  ;;  %v511_v43 = vld [vmem:[%s2037_s16 + $0xb28] sm:$0xff] }
 0x2cd   : > { %v1023_v47 = vmul.f32 %v511_v43, %v511_v43 }
 0x2ce   : > { %v1512_v49 = vadd.f32 %v1511_v46, %v1000_v42  ;;  %v512_v46 = vld [vmem:[%s2037_s16 + $0xb30] sm:$0xff] }
 0x2cf   : > { %v1024_v50 = vmul.f32 %v512_v46, %v512_v46 }
 0x2d0   : > { %v1513_v52 = vadd.f32 %v1512_v49, %v1001_v45  ;;  %v513_v49 = vld [vmem:[%s2037_s16 + $0xb38] sm:$0xff] }
 0x2d1   : > { %v1025_v53 = vmul.f32 %v513_v49, %v513_v49 }
 0x2d2   : > { %v1514_v55 = vadd.f32 %v1513_v52, %v1002_v48  ;;  %v514_v52 = vld [vmem:[%s2037_s16 + $0xb40] sm:$0xff] }
 0x2d3   : > { %v1026_v56 = vmul.f32 %v514_v52, %v514_v52 }
 0x2d4   : > { %v1515_v58 = vadd.f32 %v1514_v55, %v1003_v51  ;;  %v515_v55 = vld [vmem:[%s2037_s16 + $0xb48] sm:$0xff] }
 0x2d5   : > { %v1027_v59 = vmul.f32 %v515_v55, %v515_v55 }
 0x2d6   : > { %v1516_v61 = vadd.f32 %v1515_v58, %v1004_v54  ;;  %v516_v58 = vld [vmem:[%s2037_s16 + $0xb50] sm:$0xff] }
 0x2d7   : > { %v1028_v62 = vmul.f32 %v516_v58, %v516_v58 }
 0x2d8   : > { %v1517_v0 = vadd.f32 %v1516_v61, %v1005_v57  ;;  %v517_v61 = vld [vmem:[%s2037_s16 + $0xb58] sm:$0xff] }
 0x2d9   : > { %v1029_v1 = vmul.f32 %v517_v61, %v517_v61 }
 0x2da   : > { %v1518_v3 = vadd.f32 %v1517_v0, %v1006_v60  ;;  %v518_v0 = vld [vmem:[%s2037_s16 + $0xb60] sm:$0xff] }
 0x2db   : > { %v1030_v4 = vmul.f32 %v518_v0, %v518_v0 }
 0x2dc   : > { %v1519_v6 = vadd.f32 %v1518_v3, %v1007_v63  ;;  %v519_v3 = vld [vmem:[%s2037_s16 + $0xb68] sm:$0xff] }
 0x2dd   : > { %v1031_v7 = vmul.f32 %v519_v3, %v519_v3 }
 0x2de   : > { %v1520_v9 = vadd.f32 %v1519_v6, %v1008_v2  ;;  %v520_v6 = vld [vmem:[%s2037_s16 + $0xb70] sm:$0xff] }
 0x2df   : > { %v1032_v10 = vmul.f32 %v520_v6, %v520_v6 }
 0x2e0   : > { %v1521_v12 = vadd.f32 %v1520_v9, %v1009_v5  ;;  %v521_v9 = vld [vmem:[%s2037_s16 + $0xb78] sm:$0xff] }
 0x2e1   : > { %v1033_v13 = vmul.f32 %v521_v9, %v521_v9 }
 0x2e2   : > { %v1522_v15 = vadd.f32 %v1521_v12, %v1010_v8  ;;  %v522_v12 = vld [vmem:[%s2037_s16 + $0xb80] sm:$0xff] }
 0x2e3   : > { %v1034_v16 = vmul.f32 %v522_v12, %v522_v12 }
 0x2e4   : > { %v1523_v18 = vadd.f32 %v1522_v15, %v1011_v11  ;;  %v523_v15 = vld [vmem:[%s2037_s16 + $0xb88] sm:$0xff] }
 0x2e5   : > { %v1035_v19 = vmul.f32 %v523_v15, %v523_v15 }
 0x2e6   : > { %v1524_v21 = vadd.f32 %v1523_v18, %v1012_v14  ;;  %v524_v18 = vld [vmem:[%s2037_s16 + $0xb90] sm:$0xff] }
 0x2e7   : > { %v1036_v22 = vmul.f32 %v524_v18, %v524_v18 }
 0x2e8   : > { %v1525_v24 = vadd.f32 %v1524_v21, %v1013_v17  ;;  %v525_v21 = vld [vmem:[%s2037_s16 + $0xb98] sm:$0xff] }
 0x2e9   : > { %v1037_v25 = vmul.f32 %v525_v21, %v525_v21 }
 0x2ea   : > { %v1526_v27 = vadd.f32 %v1525_v24, %v1014_v20  ;;  %v526_v24 = vld [vmem:[%s2037_s16 + $0xba0] sm:$0xff] }
 0x2eb   : > { %v1038_v28 = vmul.f32 %v526_v24, %v526_v24 }
 0x2ec   : > { %v1527_v30 = vadd.f32 %v1526_v27, %v1015_v23  ;;  %v527_v27 = vld [vmem:[%s2037_s16 + $0xba8] sm:$0xff] }
 0x2ed   : > { %v1039_v31 = vmul.f32 %v527_v27, %v527_v27 }
 0x2ee   : > { %v1528_v33 = vadd.f32 %v1527_v30, %v1016_v26  ;;  %v528_v30 = vld [vmem:[%s2037_s16 + $0xbb0] sm:$0xff] }
 0x2ef   : > { %v1040_v34 = vmul.f32 %v528_v30, %v528_v30 }
 0x2f0   : > { %v1529_v36 = vadd.f32 %v1528_v33, %v1017_v29  ;;  %v529_v33 = vld [vmem:[%s2037_s16 + $0xbb8] sm:$0xff] }
 0x2f1   : > { %v1041_v37 = vmul.f32 %v529_v33, %v529_v33 }
 0x2f2   : > { %v1530_v39 = vadd.f32 %v1529_v36, %v1018_v32  ;;  %v530_v36 = vld [vmem:[%s2037_s16 + $0xbc0] sm:$0xff] }
 0x2f3   : > { %v1042_v40 = vmul.f32 %v530_v36, %v530_v36 }
 0x2f4   : > { %v1531_v42 = vadd.f32 %v1530_v39, %v1019_v35  ;;  %v531_v39 = vld [vmem:[%s2037_s16 + $0xbc8] sm:$0xff] }
 0x2f5   : > { %v1043_v43 = vmul.f32 %v531_v39, %v531_v39 }
 0x2f6   : > { %v1532_v45 = vadd.f32 %v1531_v42, %v1020_v38  ;;  %v532_v42 = vld [vmem:[%s2037_s16 + $0xbd0] sm:$0xff] }
 0x2f7   : > { %v1044_v46 = vmul.f32 %v532_v42, %v532_v42 }
 0x2f8   : > { %v1533_v48 = vadd.f32 %v1532_v45, %v1021_v41  ;;  %v533_v45 = vld [vmem:[%s2037_s16 + $0xbd8] sm:$0xff] }
 0x2f9   : > { %v1045_v49 = vmul.f32 %v533_v45, %v533_v45 }
 0x2fa   : > { %v1534_v51 = vadd.f32 %v1533_v48, %v1022_v44  ;;  %v534_v48 = vld [vmem:[%s2037_s16 + $0xbe0] sm:$0xff] }
 0x2fb   : > { %v1046_v52 = vmul.f32 %v534_v48, %v534_v48 }
 0x2fc   : > { %v1535_v54 = vadd.f32 %v1534_v51, %v1023_v47  ;;  %v535_v51 = vld [vmem:[%s2037_s16 + $0xbe8] sm:$0xff] }
 0x2fd   : > { %v1047_v55 = vmul.f32 %v535_v51, %v535_v51 }
 0x2fe   : > { %v1536_v57 = vadd.f32 %v1535_v54, %v1024_v50  ;;  %v536_v54 = vld [vmem:[%s2037_s16 + $0xbf0] sm:$0xff] }
 0x2ff   : > { %v1048_v58 = vmul.f32 %v536_v54, %v536_v54 }
 0x300   : > { %v1537_v60 = vadd.f32 %v1536_v57, %v1025_v53  ;;  %v537_v57 = vld [vmem:[%s2037_s16 + $0xbf8] sm:$0xff] }
 0x301   : > { %v1049_v61 = vmul.f32 %v537_v57, %v537_v57 }
 0x302   : > { %v1538_v63 = vadd.f32 %v1537_v60, %v1026_v56  ;;  %v538_v60 = vld [vmem:[%s2037_s16 + $0xc00] sm:$0xff] }
 0x303   : > { %v1050_v0 = vmul.f32 %v538_v60, %v538_v60 }
 0x304   : > { %v1539_v2 = vadd.f32 %v1538_v63, %v1027_v59  ;;  %v539_v63 = vld [vmem:[%s2037_s16 + $0xc08] sm:$0xff] }
 0x305   : > { %v1051_v3 = vmul.f32 %v539_v63, %v539_v63 }
 0x306   : > { %v1540_v5 = vadd.f32 %v1539_v2, %v1028_v62  ;;  %v540_v2 = vld [vmem:[%s2037_s16 + $0xc10] sm:$0xff] }
 0x307   : > { %v1052_v6 = vmul.f32 %v540_v2, %v540_v2 }
 0x308   : > { %v1541_v8 = vadd.f32 %v1540_v5, %v1029_v1  ;;  %v541_v5 = vld [vmem:[%s2037_s16 + $0xc18] sm:$0xff] }
 0x309   : > { %v1053_v9 = vmul.f32 %v541_v5, %v541_v5 }
 0x30a   : > { %v1542_v11 = vadd.f32 %v1541_v8, %v1030_v4  ;;  %v542_v8 = vld [vmem:[%s2037_s16 + $0xc20] sm:$0xff] }
 0x30b   : > { %v1054_v12 = vmul.f32 %v542_v8, %v542_v8 }
 0x30c   : > { %v1543_v14 = vadd.f32 %v1542_v11, %v1031_v7  ;;  %v543_v11 = vld [vmem:[%s2037_s16 + $0xc28] sm:$0xff] }
 0x30d   : > { %v1055_v15 = vmul.f32 %v543_v11, %v543_v11 }
 0x30e   : > { %v1544_v17 = vadd.f32 %v1543_v14, %v1032_v10  ;;  %v544_v14 = vld [vmem:[%s2037_s16 + $0xc30] sm:$0xff] }
 0x30f   : > { %v1056_v18 = vmul.f32 %v544_v14, %v544_v14 }
 0x310   : > { %v1545_v20 = vadd.f32 %v1544_v17, %v1033_v13  ;;  %v545_v17 = vld [vmem:[%s2037_s16 + $0xc38] sm:$0xff] }
 0x311   : > { %v1057_v21 = vmul.f32 %v545_v17, %v545_v17 }
 0x312   : > { %v1546_v23 = vadd.f32 %v1545_v20, %v1034_v16  ;;  %v546_v20 = vld [vmem:[%s2037_s16 + $0xc40] sm:$0xff] }
 0x313   : > { %v1058_v24 = vmul.f32 %v546_v20, %v546_v20 }
 0x314   : > { %v1547_v26 = vadd.f32 %v1546_v23, %v1035_v19  ;;  %v547_v23 = vld [vmem:[%s2037_s16 + $0xc48] sm:$0xff] }
 0x315   : > { %v1059_v27 = vmul.f32 %v547_v23, %v547_v23 }
 0x316   : > { %v1548_v29 = vadd.f32 %v1547_v26, %v1036_v22  ;;  %v548_v26 = vld [vmem:[%s2037_s16 + $0xc50] sm:$0xff] }
 0x317   : > { %v1060_v30 = vmul.f32 %v548_v26, %v548_v26 }
 0x318   : > { %v1549_v32 = vadd.f32 %v1548_v29, %v1037_v25  ;;  %v549_v29 = vld [vmem:[%s2037_s16 + $0xc58] sm:$0xff] }
 0x319   : > { %v1061_v33 = vmul.f32 %v549_v29, %v549_v29 }
 0x31a   : > { %v1550_v35 = vadd.f32 %v1549_v32, %v1038_v28  ;;  %v550_v32 = vld [vmem:[%s2037_s16 + $0xc60] sm:$0xff] }
 0x31b   : > { %v1062_v36 = vmul.f32 %v550_v32, %v550_v32 }
 0x31c   : > { %v1551_v38 = vadd.f32 %v1550_v35, %v1039_v31  ;;  %v551_v35 = vld [vmem:[%s2037_s16 + $0xc68] sm:$0xff] }
 0x31d   : > { %v1063_v39 = vmul.f32 %v551_v35, %v551_v35 }
 0x31e   : > { %v1552_v41 = vadd.f32 %v1551_v38, %v1040_v34  ;;  %v552_v38 = vld [vmem:[%s2037_s16 + $0xc70] sm:$0xff] }
 0x31f   : > { %v1064_v42 = vmul.f32 %v552_v38, %v552_v38 }
 0x320   : > { %v1553_v44 = vadd.f32 %v1552_v41, %v1041_v37  ;;  %v553_v41 = vld [vmem:[%s2037_s16 + $0xc78] sm:$0xff] }
 0x321   : > { %v1065_v45 = vmul.f32 %v553_v41, %v553_v41 }
 0x322   : > { %v1554_v47 = vadd.f32 %v1553_v44, %v1042_v40  ;;  %v554_v44 = vld [vmem:[%s2037_s16 + $0xc80] sm:$0xff] }
 0x323   : > { %v1066_v48 = vmul.f32 %v554_v44, %v554_v44 }
 0x324   : > { %v1555_v50 = vadd.f32 %v1554_v47, %v1043_v43  ;;  %v555_v47 = vld [vmem:[%s2037_s16 + $0xc88] sm:$0xff] }
 0x325   : > { %v1067_v51 = vmul.f32 %v555_v47, %v555_v47 }
 0x326   : > { %v1556_v53 = vadd.f32 %v1555_v50, %v1044_v46  ;;  %v556_v50 = vld [vmem:[%s2037_s16 + $0xc90] sm:$0xff] }
 0x327   : > { %v1068_v54 = vmul.f32 %v556_v50, %v556_v50 }
 0x328   : > { %v1557_v56 = vadd.f32 %v1556_v53, %v1045_v49  ;;  %v557_v53 = vld [vmem:[%s2037_s16 + $0xc98] sm:$0xff] }
 0x329   : > { %v1069_v57 = vmul.f32 %v557_v53, %v557_v53 }
 0x32a   : > { %v1558_v59 = vadd.f32 %v1557_v56, %v1046_v52  ;;  %v558_v56 = vld [vmem:[%s2037_s16 + $0xca0] sm:$0xff] }
 0x32b   : > { %v1070_v60 = vmul.f32 %v558_v56, %v558_v56 }
 0x32c   : > { %v1559_v62 = vadd.f32 %v1558_v59, %v1047_v55  ;;  %v559_v59 = vld [vmem:[%s2037_s16 + $0xca8] sm:$0xff] }
 0x32d   : > { %v1071_v63 = vmul.f32 %v559_v59, %v559_v59 }
 0x32e   : > { %v1560_v1 = vadd.f32 %v1559_v62, %v1048_v58  ;;  %v560_v62 = vld [vmem:[%s2037_s16 + $0xcb0] sm:$0xff] }
 0x32f   : > { %v1072_v2 = vmul.f32 %v560_v62, %v560_v62 }
 0x330   : > { %v1561_v4 = vadd.f32 %v1560_v1, %v1049_v61  ;;  %v561_v1 = vld [vmem:[%s2037_s16 + $0xcb8] sm:$0xff] }
 0x331   : > { %v1073_v5 = vmul.f32 %v561_v1, %v561_v1 }
 0x332   : > { %v1562_v7 = vadd.f32 %v1561_v4, %v1050_v0  ;;  %v562_v4 = vld [vmem:[%s2037_s16 + $0xcc0] sm:$0xff] }
 0x333   : > { %v1074_v8 = vmul.f32 %v562_v4, %v562_v4 }
 0x334   : > { %v1563_v10 = vadd.f32 %v1562_v7, %v1051_v3  ;;  %v563_v7 = vld [vmem:[%s2037_s16 + $0xcc8] sm:$0xff] }
 0x335   : > { %v1075_v11 = vmul.f32 %v563_v7, %v563_v7 }
 0x336   : > { %v1564_v13 = vadd.f32 %v1563_v10, %v1052_v6  ;;  %v564_v10 = vld [vmem:[%s2037_s16 + $0xcd0] sm:$0xff] }
 0x337   : > { %v1076_v14 = vmul.f32 %v564_v10, %v564_v10 }
 0x338   : > { %v1565_v16 = vadd.f32 %v1564_v13, %v1053_v9  ;;  %v565_v13 = vld [vmem:[%s2037_s16 + $0xcd8] sm:$0xff] }
 0x339   : > { %v1077_v17 = vmul.f32 %v565_v13, %v565_v13 }
 0x33a   : > { %v1566_v19 = vadd.f32 %v1565_v16, %v1054_v12  ;;  %v566_v16 = vld [vmem:[%s2037_s16 + $0xce0] sm:$0xff] }
 0x33b   : > { %v1078_v20 = vmul.f32 %v566_v16, %v566_v16 }
 0x33c   : > { %v1567_v22 = vadd.f32 %v1566_v19, %v1055_v15  ;;  %v567_v19 = vld [vmem:[%s2037_s16 + $0xce8] sm:$0xff] }
 0x33d   : > { %v1079_v23 = vmul.f32 %v567_v19, %v567_v19 }
 0x33e   : > { %v1568_v25 = vadd.f32 %v1567_v22, %v1056_v18  ;;  %v568_v22 = vld [vmem:[%s2037_s16 + $0xcf0] sm:$0xff] }
 0x33f   : > { %v1080_v26 = vmul.f32 %v568_v22, %v568_v22 }
 0x340   : > { %v1569_v28 = vadd.f32 %v1568_v25, %v1057_v21  ;;  %v569_v25 = vld [vmem:[%s2037_s16 + $0xcf8] sm:$0xff] }
 0x341   : > { %v1081_v29 = vmul.f32 %v569_v25, %v569_v25 }
 0x342   : > { %v1570_v31 = vadd.f32 %v1569_v28, %v1058_v24  ;;  %v570_v28 = vld [vmem:[%s2037_s16 + $0xd00] sm:$0xff] }
 0x343   : > { %v1082_v32 = vmul.f32 %v570_v28, %v570_v28 }
 0x344   : > { %v1571_v34 = vadd.f32 %v1570_v31, %v1059_v27  ;;  %v571_v31 = vld [vmem:[%s2037_s16 + $0xd08] sm:$0xff] }
 0x345   : > { %v1083_v35 = vmul.f32 %v571_v31, %v571_v31 }
 0x346   : > { %v1572_v37 = vadd.f32 %v1571_v34, %v1060_v30  ;;  %v572_v34 = vld [vmem:[%s2037_s16 + $0xd10] sm:$0xff] }
 0x347   : > { %v1084_v38 = vmul.f32 %v572_v34, %v572_v34 }
 0x348   : > { %v1573_v40 = vadd.f32 %v1572_v37, %v1061_v33  ;;  %v573_v37 = vld [vmem:[%s2037_s16 + $0xd18] sm:$0xff] }
 0x349   : > { %v1085_v41 = vmul.f32 %v573_v37, %v573_v37 }
 0x34a   : > { %v1574_v43 = vadd.f32 %v1573_v40, %v1062_v36  ;;  %v574_v40 = vld [vmem:[%s2037_s16 + $0xd20] sm:$0xff] }
 0x34b   : > { %v1086_v44 = vmul.f32 %v574_v40, %v574_v40 }
 0x34c   : > { %v1575_v46 = vadd.f32 %v1574_v43, %v1063_v39  ;;  %v575_v43 = vld [vmem:[%s2037_s16 + $0xd28] sm:$0xff] }
 0x34d   : > { %v1087_v47 = vmul.f32 %v575_v43, %v575_v43 }
 0x34e   : > { %v1576_v49 = vadd.f32 %v1575_v46, %v1064_v42  ;;  %v576_v46 = vld [vmem:[%s2037_s16 + $0xd30] sm:$0xff] }
 0x34f   : > { %v1088_v50 = vmul.f32 %v576_v46, %v576_v46 }
 0x350   : > { %v1577_v52 = vadd.f32 %v1576_v49, %v1065_v45  ;;  %v577_v49 = vld [vmem:[%s2037_s16 + $0xd38] sm:$0xff] }
 0x351   : > { %v1089_v53 = vmul.f32 %v577_v49, %v577_v49 }
 0x352   : > { %v1578_v55 = vadd.f32 %v1577_v52, %v1066_v48  ;;  %v578_v52 = vld [vmem:[%s2037_s16 + $0xd40] sm:$0xff] }
 0x353   : > { %v1090_v56 = vmul.f32 %v578_v52, %v578_v52 }
 0x354   : > { %v1579_v58 = vadd.f32 %v1578_v55, %v1067_v51  ;;  %v579_v55 = vld [vmem:[%s2037_s16 + $0xd48] sm:$0xff] }
 0x355   : > { %v1091_v59 = vmul.f32 %v579_v55, %v579_v55 }
 0x356   : > { %v1580_v61 = vadd.f32 %v1579_v58, %v1068_v54  ;;  %v580_v58 = vld [vmem:[%s2037_s16 + $0xd50] sm:$0xff] }
 0x357   : > { %v1092_v62 = vmul.f32 %v580_v58, %v580_v58 }
 0x358   : > { %v1581_v0 = vadd.f32 %v1580_v61, %v1069_v57  ;;  %v581_v61 = vld [vmem:[%s2037_s16 + $0xd58] sm:$0xff] }
 0x359   : > { %v1093_v1 = vmul.f32 %v581_v61, %v581_v61 }
 0x35a   : > { %v1582_v3 = vadd.f32 %v1581_v0, %v1070_v60  ;;  %v582_v0 = vld [vmem:[%s2037_s16 + $0xd60] sm:$0xff] }
 0x35b   : > { %v1094_v4 = vmul.f32 %v582_v0, %v582_v0 }
 0x35c   : > { %v1583_v6 = vadd.f32 %v1582_v3, %v1071_v63  ;;  %v583_v3 = vld [vmem:[%s2037_s16 + $0xd68] sm:$0xff] }
 0x35d   : > { %v1095_v7 = vmul.f32 %v583_v3, %v583_v3 }
 0x35e   : > { %v1584_v9 = vadd.f32 %v1583_v6, %v1072_v2  ;;  %v584_v6 = vld [vmem:[%s2037_s16 + $0xd70] sm:$0xff] }
 0x35f   : > { %v1096_v10 = vmul.f32 %v584_v6, %v584_v6 }
 0x360   : > { %v1585_v12 = vadd.f32 %v1584_v9, %v1073_v5  ;;  %v585_v9 = vld [vmem:[%s2037_s16 + $0xd78] sm:$0xff] }
 0x361   : > { %v1097_v13 = vmul.f32 %v585_v9, %v585_v9 }
 0x362   : > { %v1586_v15 = vadd.f32 %v1585_v12, %v1074_v8  ;;  %v586_v12 = vld [vmem:[%s2037_s16 + $0xd80] sm:$0xff] }
 0x363   : > { %v1098_v16 = vmul.f32 %v586_v12, %v586_v12 }
 0x364   : > { %v1587_v18 = vadd.f32 %v1586_v15, %v1075_v11  ;;  %v587_v15 = vld [vmem:[%s2037_s16 + $0xd88] sm:$0xff] }
 0x365   : > { %v1099_v19 = vmul.f32 %v587_v15, %v587_v15 }
 0x366   : > { %v1588_v21 = vadd.f32 %v1587_v18, %v1076_v14  ;;  %v588_v18 = vld [vmem:[%s2037_s16 + $0xd90] sm:$0xff] }
 0x367   : > { %v1100_v22 = vmul.f32 %v588_v18, %v588_v18 }
 0x368   : > { %v1589_v24 = vadd.f32 %v1588_v21, %v1077_v17  ;;  %v589_v21 = vld [vmem:[%s2037_s16 + $0xd98] sm:$0xff] }
 0x369   : > { %v1101_v25 = vmul.f32 %v589_v21, %v589_v21 }
 0x36a   : > { %v1590_v27 = vadd.f32 %v1589_v24, %v1078_v20  ;;  %v590_v24 = vld [vmem:[%s2037_s16 + $0xda0] sm:$0xff] }
 0x36b   : > { %v1102_v28 = vmul.f32 %v590_v24, %v590_v24 }
 0x36c   : > { %v1591_v30 = vadd.f32 %v1590_v27, %v1079_v23  ;;  %v591_v27 = vld [vmem:[%s2037_s16 + $0xda8] sm:$0xff] }
 0x36d   : > { %v1103_v31 = vmul.f32 %v591_v27, %v591_v27 }
 0x36e   : > { %v1592_v33 = vadd.f32 %v1591_v30, %v1080_v26  ;;  %v592_v30 = vld [vmem:[%s2037_s16 + $0xdb0] sm:$0xff] }
 0x36f   : > { %v1104_v34 = vmul.f32 %v592_v30, %v592_v30 }
 0x370   : > { %v1593_v36 = vadd.f32 %v1592_v33, %v1081_v29  ;;  %v593_v33 = vld [vmem:[%s2037_s16 + $0xdb8] sm:$0xff] }
 0x371   : > { %v1105_v37 = vmul.f32 %v593_v33, %v593_v33 }
 0x372   : > { %v1594_v39 = vadd.f32 %v1593_v36, %v1082_v32  ;;  %v594_v36 = vld [vmem:[%s2037_s16 + $0xdc0] sm:$0xff] }
 0x373   : > { %v1106_v40 = vmul.f32 %v594_v36, %v594_v36 }
 0x374   : > { %v1595_v42 = vadd.f32 %v1594_v39, %v1083_v35  ;;  %v595_v39 = vld [vmem:[%s2037_s16 + $0xdc8] sm:$0xff] }
 0x375   : > { %v1107_v43 = vmul.f32 %v595_v39, %v595_v39 }
 0x376   : > { %v1596_v45 = vadd.f32 %v1595_v42, %v1084_v38  ;;  %v596_v42 = vld [vmem:[%s2037_s16 + $0xdd0] sm:$0xff] }
 0x377   : > { %v1108_v46 = vmul.f32 %v596_v42, %v596_v42 }
 0x378   : > { %v1597_v48 = vadd.f32 %v1596_v45, %v1085_v41  ;;  %v597_v45 = vld [vmem:[%s2037_s16 + $0xdd8] sm:$0xff] }
 0x379   : > { %v1109_v49 = vmul.f32 %v597_v45, %v597_v45 }
 0x37a   : > { %v1598_v51 = vadd.f32 %v1597_v48, %v1086_v44  ;;  %v598_v48 = vld [vmem:[%s2037_s16 + $0xde0] sm:$0xff] }
 0x37b   : > { %v1110_v52 = vmul.f32 %v598_v48, %v598_v48 }
 0x37c   : > { %v1599_v54 = vadd.f32 %v1598_v51, %v1087_v47  ;;  %v599_v51 = vld [vmem:[%s2037_s16 + $0xde8] sm:$0xff] }
 0x37d   : > { %v1111_v55 = vmul.f32 %v599_v51, %v599_v51 }
 0x37e   : > { %v1600_v57 = vadd.f32 %v1599_v54, %v1088_v50  ;;  %v600_v54 = vld [vmem:[%s2037_s16 + $0xdf0] sm:$0xff] }
 0x37f   : > { %v1112_v58 = vmul.f32 %v600_v54, %v600_v54 }
 0x380   : > { %v1601_v60 = vadd.f32 %v1600_v57, %v1089_v53  ;;  %v601_v57 = vld [vmem:[%s2037_s16 + $0xdf8] sm:$0xff] }
 0x381   : > { %v1113_v61 = vmul.f32 %v601_v57, %v601_v57 }
 0x382   : > { %v1602_v63 = vadd.f32 %v1601_v60, %v1090_v56  ;;  %v602_v60 = vld [vmem:[%s2037_s16 + $0xe00] sm:$0xff] }
 0x383   : > { %v1114_v0 = vmul.f32 %v602_v60, %v602_v60 }
 0x384   : > { %v1603_v2 = vadd.f32 %v1602_v63, %v1091_v59  ;;  %v603_v63 = vld [vmem:[%s2037_s16 + $0xe08] sm:$0xff] }
 0x385   : > { %v1115_v3 = vmul.f32 %v603_v63, %v603_v63 }
 0x386   : > { %v1604_v5 = vadd.f32 %v1603_v2, %v1092_v62  ;;  %v604_v2 = vld [vmem:[%s2037_s16 + $0xe10] sm:$0xff] }
 0x387   : > { %v1116_v6 = vmul.f32 %v604_v2, %v604_v2 }
 0x388   : > { %v1605_v8 = vadd.f32 %v1604_v5, %v1093_v1  ;;  %v605_v5 = vld [vmem:[%s2037_s16 + $0xe18] sm:$0xff] }
 0x389   : > { %v1117_v9 = vmul.f32 %v605_v5, %v605_v5 }
 0x38a   : > { %v1606_v11 = vadd.f32 %v1605_v8, %v1094_v4  ;;  %v606_v8 = vld [vmem:[%s2037_s16 + $0xe20] sm:$0xff] }
 0x38b   : > { %v1118_v12 = vmul.f32 %v606_v8, %v606_v8 }
 0x38c   : > { %v1607_v14 = vadd.f32 %v1606_v11, %v1095_v7  ;;  %v607_v11 = vld [vmem:[%s2037_s16 + $0xe28] sm:$0xff] }
 0x38d   : > { %v1119_v15 = vmul.f32 %v607_v11, %v607_v11 }
 0x38e   : > { %v1608_v17 = vadd.f32 %v1607_v14, %v1096_v10  ;;  %v608_v14 = vld [vmem:[%s2037_s16 + $0xe30] sm:$0xff] }
 0x38f   : > { %v1120_v18 = vmul.f32 %v608_v14, %v608_v14 }
 0x390   : > { %v1609_v20 = vadd.f32 %v1608_v17, %v1097_v13  ;;  %v609_v17 = vld [vmem:[%s2037_s16 + $0xe38] sm:$0xff] }
 0x391   : > { %v1121_v21 = vmul.f32 %v609_v17, %v609_v17 }
 0x392   : > { %v1610_v23 = vadd.f32 %v1609_v20, %v1098_v16  ;;  %v610_v20 = vld [vmem:[%s2037_s16 + $0xe40] sm:$0xff] }
 0x393   : > { %v1122_v24 = vmul.f32 %v610_v20, %v610_v20 }
 0x394   : > { %v1611_v26 = vadd.f32 %v1610_v23, %v1099_v19  ;;  %v611_v23 = vld [vmem:[%s2037_s16 + $0xe48] sm:$0xff] }
 0x395   : > { %v1123_v27 = vmul.f32 %v611_v23, %v611_v23 }
 0x396   : > { %v1612_v29 = vadd.f32 %v1611_v26, %v1100_v22  ;;  %v612_v26 = vld [vmem:[%s2037_s16 + $0xe50] sm:$0xff] }
 0x397   : > { %v1124_v30 = vmul.f32 %v612_v26, %v612_v26 }
 0x398   : > { %v1613_v32 = vadd.f32 %v1612_v29, %v1101_v25  ;;  %v613_v29 = vld [vmem:[%s2037_s16 + $0xe58] sm:$0xff] }
 0x399   : > { %v1125_v33 = vmul.f32 %v613_v29, %v613_v29 }
 0x39a   : > { %v1614_v35 = vadd.f32 %v1613_v32, %v1102_v28  ;;  %v614_v32 = vld [vmem:[%s2037_s16 + $0xe60] sm:$0xff] }
 0x39b   : > { %v1126_v36 = vmul.f32 %v614_v32, %v614_v32 }
 0x39c   : > { %v1615_v38 = vadd.f32 %v1614_v35, %v1103_v31  ;;  %v615_v35 = vld [vmem:[%s2037_s16 + $0xe68] sm:$0xff] }
 0x39d   : > { %v1127_v39 = vmul.f32 %v615_v35, %v615_v35 }
 0x39e   : > { %v1616_v41 = vadd.f32 %v1615_v38, %v1104_v34  ;;  %v616_v38 = vld [vmem:[%s2037_s16 + $0xe70] sm:$0xff] }
 0x39f   : > { %v1128_v42 = vmul.f32 %v616_v38, %v616_v38 }
 0x3a0   : > { %v1617_v44 = vadd.f32 %v1616_v41, %v1105_v37  ;;  %v617_v41 = vld [vmem:[%s2037_s16 + $0xe78] sm:$0xff] }
 0x3a1   : > { %v1129_v45 = vmul.f32 %v617_v41, %v617_v41 }
 0x3a2   : > { %v1618_v47 = vadd.f32 %v1617_v44, %v1106_v40  ;;  %v618_v44 = vld [vmem:[%s2037_s16 + $0xe80] sm:$0xff] }
 0x3a3   : > { %v1130_v48 = vmul.f32 %v618_v44, %v618_v44 }
 0x3a4   : > { %v1619_v50 = vadd.f32 %v1618_v47, %v1107_v43  ;;  %v619_v47 = vld [vmem:[%s2037_s16 + $0xe88] sm:$0xff] }
 0x3a5   : > { %v1131_v51 = vmul.f32 %v619_v47, %v619_v47 }
 0x3a6   : > { %v1620_v53 = vadd.f32 %v1619_v50, %v1108_v46  ;;  %v620_v50 = vld [vmem:[%s2037_s16 + $0xe90] sm:$0xff] }
 0x3a7   : > { %v1132_v54 = vmul.f32 %v620_v50, %v620_v50 }
 0x3a8   : > { %v1621_v56 = vadd.f32 %v1620_v53, %v1109_v49  ;;  %v621_v53 = vld [vmem:[%s2037_s16 + $0xe98] sm:$0xff] }
 0x3a9   : > { %v1133_v57 = vmul.f32 %v621_v53, %v621_v53 }
 0x3aa   : > { %v1622_v59 = vadd.f32 %v1621_v56, %v1110_v52  ;;  %v622_v56 = vld [vmem:[%s2037_s16 + $0xea0] sm:$0xff] }
 0x3ab   : > { %v1134_v60 = vmul.f32 %v622_v56, %v622_v56 }
 0x3ac   : > { %v1623_v62 = vadd.f32 %v1622_v59, %v1111_v55  ;;  %v623_v59 = vld [vmem:[%s2037_s16 + $0xea8] sm:$0xff] }
 0x3ad   : > { %v1135_v63 = vmul.f32 %v623_v59, %v623_v59 }
 0x3ae   : > { %v1624_v1 = vadd.f32 %v1623_v62, %v1112_v58  ;;  %v624_v62 = vld [vmem:[%s2037_s16 + $0xeb0] sm:$0xff] }
 0x3af   : > { %v1136_v2 = vmul.f32 %v624_v62, %v624_v62 }
 0x3b0   : > { %v1625_v4 = vadd.f32 %v1624_v1, %v1113_v61  ;;  %v625_v1 = vld [vmem:[%s2037_s16 + $0xeb8] sm:$0xff] }
 0x3b1   : > { %v1137_v5 = vmul.f32 %v625_v1, %v625_v1 }
 0x3b2   : > { %v1626_v7 = vadd.f32 %v1625_v4, %v1114_v0  ;;  %v626_v4 = vld [vmem:[%s2037_s16 + $0xec0] sm:$0xff] }
 0x3b3   : > { %v1138_v8 = vmul.f32 %v626_v4, %v626_v4 }
 0x3b4   : > { %v1627_v10 = vadd.f32 %v1626_v7, %v1115_v3  ;;  %v627_v7 = vld [vmem:[%s2037_s16 + $0xec8] sm:$0xff] }
 0x3b5   : > { %v1139_v11 = vmul.f32 %v627_v7, %v627_v7 }
 0x3b6   : > { %v1628_v13 = vadd.f32 %v1627_v10, %v1116_v6  ;;  %v628_v10 = vld [vmem:[%s2037_s16 + $0xed0] sm:$0xff] }
 0x3b7   : > { %v1140_v14 = vmul.f32 %v628_v10, %v628_v10 }
 0x3b8   : > { %v1629_v16 = vadd.f32 %v1628_v13, %v1117_v9  ;;  %v629_v13 = vld [vmem:[%s2037_s16 + $0xed8] sm:$0xff] }
 0x3b9   : > { %v1141_v17 = vmul.f32 %v629_v13, %v629_v13 }
 0x3ba   : > { %v1630_v19 = vadd.f32 %v1629_v16, %v1118_v12  ;;  %v630_v16 = vld [vmem:[%s2037_s16 + $0xee0] sm:$0xff] }
 0x3bb   : > { %v1142_v20 = vmul.f32 %v630_v16, %v630_v16 }
 0x3bc   : > { %v1631_v22 = vadd.f32 %v1630_v19, %v1119_v15  ;;  %v631_v19 = vld [vmem:[%s2037_s16 + $0xee8] sm:$0xff] }
 0x3bd   : > { %v1143_v23 = vmul.f32 %v631_v19, %v631_v19 }
 0x3be   : > { %v1632_v25 = vadd.f32 %v1631_v22, %v1120_v18  ;;  %v632_v22 = vld [vmem:[%s2037_s16 + $0xef0] sm:$0xff] }
 0x3bf   : > { %v1144_v26 = vmul.f32 %v632_v22, %v632_v22 }
 0x3c0   : > { %v1633_v28 = vadd.f32 %v1632_v25, %v1121_v21  ;;  %v633_v25 = vld [vmem:[%s2037_s16 + $0xef8] sm:$0xff] }
 0x3c1   : > { %v1145_v29 = vmul.f32 %v633_v25, %v633_v25 }
 0x3c2   : > { %v1634_v31 = vadd.f32 %v1633_v28, %v1122_v24  ;;  %v634_v28 = vld [vmem:[%s2037_s16 + $0xf00] sm:$0xff] }
 0x3c3   : > { %v1146_v32 = vmul.f32 %v634_v28, %v634_v28 }
 0x3c4   : > { %v1635_v34 = vadd.f32 %v1634_v31, %v1123_v27  ;;  %v635_v31 = vld [vmem:[%s2037_s16 + $0xf08] sm:$0xff] }
 0x3c5   : > { %v1147_v35 = vmul.f32 %v635_v31, %v635_v31 }
 0x3c6   : > { %v1636_v37 = vadd.f32 %v1635_v34, %v1124_v30  ;;  %v636_v34 = vld [vmem:[%s2037_s16 + $0xf10] sm:$0xff] }
 0x3c7   : > { %v1148_v38 = vmul.f32 %v636_v34, %v636_v34 }
 0x3c8   : > { %v1637_v40 = vadd.f32 %v1636_v37, %v1125_v33  ;;  %v637_v37 = vld [vmem:[%s2037_s16 + $0xf18] sm:$0xff] }
 0x3c9   : > { %v1149_v41 = vmul.f32 %v637_v37, %v637_v37 }
 0x3ca   : > { %v1638_v43 = vadd.f32 %v1637_v40, %v1126_v36  ;;  %v638_v40 = vld [vmem:[%s2037_s16 + $0xf20] sm:$0xff] }
 0x3cb   : > { %v1150_v44 = vmul.f32 %v638_v40, %v638_v40 }
 0x3cc   : > { %v1639_v46 = vadd.f32 %v1638_v43, %v1127_v39  ;;  %v639_v43 = vld [vmem:[%s2037_s16 + $0xf28] sm:$0xff] }
 0x3cd   : > { %v1151_v47 = vmul.f32 %v639_v43, %v639_v43 }
 0x3ce   : > { %v1640_v49 = vadd.f32 %v1639_v46, %v1128_v42  ;;  %v640_v46 = vld [vmem:[%s2037_s16 + $0xf30] sm:$0xff] }
 0x3cf   : > { %v1152_v50 = vmul.f32 %v640_v46, %v640_v46 }
 0x3d0   : > { %v1641_v52 = vadd.f32 %v1640_v49, %v1129_v45  ;;  %v641_v49 = vld [vmem:[%s2037_s16 + $0xf38] sm:$0xff] }
 0x3d1   : > { %v1153_v53 = vmul.f32 %v641_v49, %v641_v49 }
 0x3d2   : > { %v1642_v55 = vadd.f32 %v1641_v52, %v1130_v48  ;;  %v642_v52 = vld [vmem:[%s2037_s16 + $0xf40] sm:$0xff] }
 0x3d3   : > { %v1154_v56 = vmul.f32 %v642_v52, %v642_v52 }
 0x3d4   : > { %v1643_v58 = vadd.f32 %v1642_v55, %v1131_v51  ;;  %v643_v55 = vld [vmem:[%s2037_s16 + $0xf48] sm:$0xff] }
 0x3d5   : > { %v1155_v59 = vmul.f32 %v643_v55, %v643_v55 }
 0x3d6   : > { %v1644_v61 = vadd.f32 %v1643_v58, %v1132_v54  ;;  %v644_v58 = vld [vmem:[%s2037_s16 + $0xf50] sm:$0xff] }
 0x3d7   : > { %v1156_v62 = vmul.f32 %v644_v58, %v644_v58 }
 0x3d8   : > { %v1645_v0 = vadd.f32 %v1644_v61, %v1133_v57  ;;  %v645_v61 = vld [vmem:[%s2037_s16 + $0xf58] sm:$0xff] }
 0x3d9   : > { %v1157_v1 = vmul.f32 %v645_v61, %v645_v61 }
 0x3da   : > { %v1646_v3 = vadd.f32 %v1645_v0, %v1134_v60  ;;  %v646_v0 = vld [vmem:[%s2037_s16 + $0xf60] sm:$0xff] }
 0x3db   : > { %v1158_v4 = vmul.f32 %v646_v0, %v646_v0 }
 0x3dc   : > { %v1647_v6 = vadd.f32 %v1646_v3, %v1135_v63  ;;  %v647_v3 = vld [vmem:[%s2037_s16 + $0xf68] sm:$0xff] }
 0x3dd   : > { %v1159_v7 = vmul.f32 %v647_v3, %v647_v3 }
 0x3de   : > { %v1648_v9 = vadd.f32 %v1647_v6, %v1136_v2  ;;  %v648_v6 = vld [vmem:[%s2037_s16 + $0xf70] sm:$0xff] }
 0x3df   : > { %v1160_v10 = vmul.f32 %v648_v6, %v648_v6 }
 0x3e0   : > { %v1649_v12 = vadd.f32 %v1648_v9, %v1137_v5  ;;  %v649_v9 = vld [vmem:[%s2037_s16 + $0xf78] sm:$0xff] }
 0x3e1   : > { %v1161_v13 = vmul.f32 %v649_v9, %v649_v9 }
 0x3e2   : > { %v1650_v15 = vadd.f32 %v1649_v12, %v1138_v8  ;;  %v650_v12 = vld [vmem:[%s2037_s16 + $0xf80] sm:$0xff] }
 0x3e3   : > { %v1162_v16 = vmul.f32 %v650_v12, %v650_v12 }
 0x3e4   : > { %v1651_v18 = vadd.f32 %v1650_v15, %v1139_v11  ;;  %v651_v15 = vld [vmem:[%s2037_s16 + $0xf88] sm:$0xff] }
 0x3e5   : > { %v1163_v19 = vmul.f32 %v651_v15, %v651_v15 }
 0x3e6   : > { %v1652_v21 = vadd.f32 %v1651_v18, %v1140_v14  ;;  %v652_v18 = vld [vmem:[%s2037_s16 + $0xf90] sm:$0xff] }
 0x3e7   : > { %v1164_v22 = vmul.f32 %v652_v18, %v652_v18 }
 0x3e8   : > { %v1653_v24 = vadd.f32 %v1652_v21, %v1141_v17  ;;  %v653_v21 = vld [vmem:[%s2037_s16 + $0xf98] sm:$0xff] }
 0x3e9   : > { %v1165_v25 = vmul.f32 %v653_v21, %v653_v21 }
 0x3ea   : > { %v1654_v27 = vadd.f32 %v1653_v24, %v1142_v20  ;;  %v654_v24 = vld [vmem:[%s2037_s16 + $0xfa0] sm:$0xff] }
 0x3eb   : > { %v1166_v28 = vmul.f32 %v654_v24, %v654_v24 }
 0x3ec   : > { %v1655_v30 = vadd.f32 %v1654_v27, %v1143_v23  ;;  %v655_v27 = vld [vmem:[%s2037_s16 + $0xfa8] sm:$0xff] }
 0x3ed   : > { %v1167_v31 = vmul.f32 %v655_v27, %v655_v27 }
 0x3ee   : > { %v1656_v33 = vadd.f32 %v1655_v30, %v1144_v26  ;;  %v656_v30 = vld [vmem:[%s2037_s16 + $0xfb0] sm:$0xff] }
 0x3ef   : > { %v1168_v34 = vmul.f32 %v656_v30, %v656_v30 }
 0x3f0   : > { %v1657_v36 = vadd.f32 %v1656_v33, %v1145_v29  ;;  %v657_v33 = vld [vmem:[%s2037_s16 + $0xfb8] sm:$0xff] }
 0x3f1   : > { %v1169_v37 = vmul.f32 %v657_v33, %v657_v33 }
 0x3f2   : > { %v1658_v39 = vadd.f32 %v1657_v36, %v1146_v32  ;;  %v658_v36 = vld [vmem:[%s2037_s16 + $0xfc0] sm:$0xff] }
 0x3f3   : > { %v1170_v40 = vmul.f32 %v658_v36, %v658_v36 }
 0x3f4   : > { %v1659_v42 = vadd.f32 %v1658_v39, %v1147_v35  ;;  %v659_v39 = vld [vmem:[%s2037_s16 + $0xfc8] sm:$0xff] }
 0x3f5   : > { %v1171_v43 = vmul.f32 %v659_v39, %v659_v39 }
 0x3f6   : > { %v1660_v45 = vadd.f32 %v1659_v42, %v1148_v38  ;;  %v660_v42 = vld [vmem:[%s2037_s16 + $0xfd0] sm:$0xff] }
 0x3f7   : > { %v1172_v46 = vmul.f32 %v660_v42, %v660_v42 }
 0x3f8   : > { %v1661_v48 = vadd.f32 %v1660_v45, %v1149_v41  ;;  %v661_v45 = vld [vmem:[%s2037_s16 + $0xfd8] sm:$0xff] }
 0x3f9   : > { %v1173_v49 = vmul.f32 %v661_v45, %v661_v45 }
 0x3fa   : > { %v1662_v51 = vadd.f32 %v1661_v48, %v1150_v44  ;;  %v662_v48 = vld [vmem:[%s2037_s16 + $0xfe0] sm:$0xff] }
 0x3fb   : > { %v1174_v52 = vmul.f32 %v662_v48, %v662_v48 }
 0x3fc   : > { %v1663_v54 = vadd.f32 %v1662_v51, %v1151_v47  ;;  %v663_v51 = vld [vmem:[%s2037_s16 + $0xfe8] sm:$0xff] }
 0x3fd   : > { %v1175_v55 = vmul.f32 %v663_v51, %v663_v51 }
 0x3fe   : > { %v1664_v57 = vadd.f32 %v1663_v54, %v1152_v50  ;;  %v664_v54 = vld [vmem:[%s2037_s16 + $0xff0] sm:$0xff] }
 0x3ff   : > { %v1176_v58 = vmul.f32 %v664_v54, %v664_v54 }
 0x400   : > { %v1665_v60 = vadd.f32 %v1664_v57, %v1153_v53  ;;  %v665_v57 = vld [vmem:[%s2037_s16 + $0xff8] sm:$0xff] }
 0x402   : > { %v1666_v63 = vadd.f32 %v1665_v60, %v1154_v56  ;;  %v1177_v60 = vmul.f32 %v665_v57, %v665_v57 }
 0x404   : > { %v1667_v2 = vadd.f32 %v1666_v63, %v1155_v59  ;;  %v1178_v63 = vld [vmem:[#allocation5] sm:$0xff] }
 0x406   : > { %v1668_v5 = vadd.f32 %v1667_v2, %v1156_v62 }
 0x408   : > { %v1669_v8 = vadd.f32 %v1668_v5, %v1157_v1 }
 0x40a   : > { %v1670_v11 = vadd.f32 %v1669_v8, %v1158_v4 }
 0x40c   : > { %v1671_v14 = vadd.f32 %v1670_v11, %v1159_v7 }
 0x40e   : > { %v1672_v17 = vadd.f32 %v1671_v14, %v1160_v10 }
 0x410   : > { %v1673_v20 = vadd.f32 %v1672_v17, %v1161_v13 }
 0x412   : > { %v1674_v23 = vadd.f32 %v1673_v20, %v1162_v16 }
 0x414   : > { %v1675_v26 = vadd.f32 %v1674_v23, %v1163_v19 }
 0x416   : > { %v1676_v29 = vadd.f32 %v1675_v26, %v1164_v22 }
 0x418   : > { %v1677_v32 = vadd.f32 %v1676_v29, %v1165_v25 }
 0x41a   : > { %v1678_v35 = vadd.f32 %v1677_v32, %v1166_v28 }
 0x41c   : > { %v1679_v38 = vadd.f32 %v1678_v35, %v1167_v31 }
 0x41e   : > { %v1680_v41 = vadd.f32 %v1679_v38, %v1168_v34 }
 0x420   : > { %v1681_v44 = vadd.f32 %v1680_v41, %v1169_v37 }
 0x422   : > { %v1682_v47 = vadd.f32 %v1681_v44, %v1170_v40 }
 0x424   : > { %v1683_v50 = vadd.f32 %v1682_v47, %v1171_v43 }
 0x426   : > { %v1684_v53 = vadd.f32 %v1683_v50, %v1172_v46 }
 0x428   : > { %v1685_v56 = vadd.f32 %v1684_v53, %v1173_v49 }
 0x42a   : > { %v1686_v59 = vadd.f32 %v1685_v56, %v1174_v52 }
 0x42c   : > { %v1687_v61 = vadd.f32 %v1686_v59, %v1175_v55 }
 0x42e   : > { %v1688_v62 = vadd.f32 %v1687_v61, %v1176_v58 }
 0x430   : > { %v1689_v0 = vadd.f32 %v1688_v62, %v1177_v60 }
 0x432   : > { %v1690_v1 = vadd.f32 %v1689_v0, %v1178_v63 }
 0x434   : > { %1691 = vst [vmem:[#allocation5] sm:$0xff] %v1690_v1 }
 0x435   : > { %1884 = shalt.err (!%p1881_p1)
}
 0x436   : > { %1781 = dma.vmem_to_hbm [thread:$0]  (%p2558_p7), %s1702_s17, 128, %s2592_s1, [#allocation4]  }
 0x437   : > { %1924 = dma.done.wait (%p2558_p7), [#allocation4], 128  }
 0x438   : > { %1926 = vsyncadd (%p2558_p7), [#allocation4], 4294967168 }
 0x439 PF: > { %s15_s11 = sadd.s32 1, %s1949_s11   ;;  %s2597_s6 = smov %s1933_s7 }
 0x43a   : > { %p12_p2 = scmp.ge.s32.totalorder %s15_s11, 4   ;;  %s2598_s7 = smov %s1937_s8 }
 0x43b   : > { %s2599_s8 = smov %s2017_s18  ;;  %s2600_s9 = smov %s1945_s10 }
 0x43c   : > { %s2601_s10 = smov %s2603_s13  ;;  %14 = sbr.rel (!%p12_p2) target bundleno = 5 (0x5), region = 66 }
 0x441   :  { %1714 = vsyncpa [#allocation3], 1 }
 0x442   :  { %1716 = vsyncpa [#allocation3 + $0x1], 1 }
 0x443   :  { %1717 = vsyncpa [#allocation4], 1 }
 0x444   :  { %1719 = vsyncpa [#allocation4 + $0x1], 1 }

</bundles_post_ra>
